<compile_context>
chip_gen: v7x
topology: tpu7x:2x2x1
jax: 0.10.0
libtpu: 0.0.40
codegen_flags: <defaults>
</compile_context>

<pallas_src>
import math

import jax
import jax.numpy as jnp
import numpy as np
from jax import lax
from jax.experimental import pallas as pl
from jax.experimental.pallas import tpu as pltpu


def make_chebygin_kernel(K, aggregation):
    """Laplacian -> Chebyshev basis -> fused Linear (transposed) -> ReLU -> mask."""

    def kernel(x_ref, a_ref, mask_ref, w_ref, b_ref, o_ref):
        Bt, N, F = x_ref.shape
        Fout = o_ref.shape[0]
        M = Bt * N

        A = a_ref[...].astype(jnp.float32)                 # (Bt, N, N)
        X = x_ref[...].astype(jnp.float32)                 # (Bt, N, F)

        # D[b, j] = sum_i A[b, i, j]  (== torch.sum(A, dim=1)).  Identity for
        # K == 1 is already folded into A by the wrapper.
        D = jnp.sum(A, axis=1)                             # (Bt, N)
        D_hat = lax.rsqrt(D + 1e-5)                        # EUP slot (free-ish)
        row_scale = D_hat if K == 1 else -D_hat            # fold -L sign into scaling
        L = row_scale[:, :, None] * A * D_hat[:, None, :]  # (Bt, N, N)

        # Chebyshev basis T_k(L) X, statically unrolled over K.
        if K == 1:
            Xt = [jnp.einsum("bij,bjf->bif", L, X,
                             preferred_element_type=jnp.float32)]
        else:
            Xt = [X, jnp.einsum("bij,bjf->bif", L, X,
                                preferred_element_type=jnp.float32)]
            if K > 2:
                L2 = 2.0 * L                               # hoisted out of recurrence
                for k in range(2, K):
                    Xt.append(jnp.einsum("bij,bjf->bif", L2, Xt[k - 1],
                                         preferred_element_type=jnp.float32)
                              - Xt[k - 2])

        if aggregation == "sum":
            Dcol = D[:, :, None]
            if K == 1:
                Xt = [Xt[0] * Dcol]
            else:
                # GIN-style: order 0 unscaled, higher orders scaled by degree.
                Xt = [Xt[0]] + [t * Dcol for t in Xt[1:]]

        # Fused fc in transposed, lane-dense layout:
        #   acc[o, b*N + n] = sum_k sum_f W[o, k*F + f] * Xt_k[b, n, f]
        # (equivalent to y.view(B, N, -1) @ W.T, but the output lane axis is
        #  Bt*N >= 128 so the final store is an unmasked full-width vst).
        acc = None
        for k in range(K):
            wk = w_ref[k]                                  # (Fout, F), static index
            xk = Xt[k].reshape(M, F)                       # (Bt*N, F)
            part = lax.dot_general(wk, xk, (((1,), (1,)), ((), ())),
                                   preferred_element_type=jnp.float32)
            acc = part if acc is None else acc + part      # (Fout, Bt*N)

        y = jnp.maximum(acc + b_ref[...], 0.0)             # bias lane-broadcast + ReLU
        y = y * mask_ref[...]                              # (1, Bt*N) sublane broadcast
        o_ref[...] = y.astype(o_ref.dtype)

    return kernel


def _auto_batch_tile(B, N, F, Fout, K, vmem_budget_bytes=12 * 2**20):
    """Pick a batch tile from the VMEM footprint; keep >=2 grid steps for v7x."""
    # Unit that makes Bt*N a multiple of 128 (lane-dense store + legal BlockSpec
    # last-dims when the grid has more than one step).
    unit = 128 // math.gcd(N, 128)
    # Rough per-graph VMEM footprint: double-buffered I/O blocks plus the main
    # in-kernel temporaries (A, L, 2L, Xt[0..K-1], transposed fc accumulator, D).
    per_graph = 4 * (
        2 * (N * F + N * N + N + N * Fout)                 # double-buffered x, A, mask, out
        + 3 * N * N + (K + 1) * N * F + N * Fout + 4 * N   # temporaries
    )
    bt_max = max(unit, vmem_budget_bytes // per_graph)
    # >= 2 grid steps when the batch allows it (shards across v7x's two TCs);
    # on single-TC v5e/v6e one or two big steps is already the right shape.
    bt = min(bt_max, max(unit, -(-B // 2)))
    bt = -(-bt // unit) * unit                             # round up to the unit
    return int(bt)


def chebygin_layer(x, A, mask, W, b, *, K=3, aggregation="mean",
                   batch_tile=None, bf16_adjacency=False):
    """x: (B,N,F), A: (B,N,N), mask: (B,N) or (B,N,1), W: (Fout, K*F), b: (Fout,)."""
    B, N, F = x.shape
    Fout = W.shape[0]
    assert W.shape == (Fout, K * F)
    assert aggregation in ("mean", "sum")

    x = x.astype(jnp.float32)
    A = A.astype(jnp.float32)
    if K == 1:
        # torch path adds the identity before building the Laplacian when K == 1.
        A = A + jnp.eye(N, dtype=A.dtype)[None]
    mask2 = (mask[..., 0] if mask.ndim == 3 else mask).astype(jnp.float32)

    # Per-order weights (K, Fout, F): W[o, k*F + f] -> W3[k, o, f] (alignment-safe).
    W3 = jnp.transpose(jnp.asarray(W, jnp.float32).reshape(Fout, K, F), (1, 0, 2))
    b2 = jnp.asarray(b, jnp.float32).reshape(Fout, 1)

    unit = 128 // math.gcd(N, 128)
    if batch_tile is None:
        Bt = _auto_batch_tile(B, N, F, Fout, K)
    else:
        Bt = max(unit, (-(-int(batch_tile) // unit)) * unit)

    Bp = -(-B // Bt) * Bt                                  # pad batch to a multiple of Bt
    if Bp != B:
        pad = Bp - B
        x = jnp.pad(x, ((0, pad), (0, 0), (0, 0)))
        A = jnp.pad(A, ((0, pad), (0, 0), (0, 0)))
        mask2 = jnp.pad(mask2, ((0, pad), (0, 0)))         # padded graphs masked out

    if bf16_adjacency:
        # Halves the dominant HBM read (A) on bandwidth-bound v5e/v6e; the
        # kernel upcasts to f32 so all normalization/recurrence math stays f32.
        A = A.astype(jnp.bfloat16)

    mask_flat = mask2.reshape(1, Bp * N)                   # lane-dense node mask
    M_blk = Bt * N
    grid = (Bp // Bt,)

    # Advisory cost hint so XLA can overlap this call with neighbouring ops.
    n_prop = 1 if K == 1 else K - 1
    flops = int(Bp * (n_prop * 2 * N * N * F + 2 * N * K * F * Fout))
    bytes_accessed = int(A.dtype.itemsize * Bp * N * N
                         + 4 * (Bp * N * F + Bp * N + K * F * Fout + Fout
                                + Fout * Bp * N))
    cost = pl.CostEstimate(flops=flops, transcendentals=int(Bp * N),
                           bytes_accessed=bytes_accessed)

    # Explicit VMEM limit (double-buffered blocks + resident params + headroom);
    # clamped well below v7x's 64 MiB physical VMEM.
    step_bytes = (2 * (x.dtype.itemsize * Bt * N * F
                       + A.dtype.itemsize * Bt * N * N
                       + 4 * Bt * N + 4 * Fout * Bt * N)
                  + 4 * (K * F * Fout + Fout))
    vmem_limit = int(min(max(4 * step_bytes, 16 * 2**20), 48 * 2**20))

    out = pl.pallas_call(
        make_chebygin_kernel(K, aggregation),
        out_shape=jax.ShapeDtypeStruct((Fout, Bp * N), jnp.float32),
        grid=grid,
        in_specs=[
            pl.BlockSpec((Bt, N, F), lambda bi: (bi, 0, 0)),       # x
            pl.BlockSpec((Bt, N, N), lambda bi: (bi, 0, 0)),       # A
            pl.BlockSpec((1, M_blk), lambda bi: (0, bi)),          # mask (lane-dense)
            pl.BlockSpec((K, Fout, F), lambda bi: (0, 0, 0)),      # per-order weights
            pl.BlockSpec((Fout, 1), lambda bi: (0, 0)),            # bias
        ],
        out_specs=pl.BlockSpec((Fout, M_blk), lambda bi: (0, bi)), # lane-dense store
        compiler_params=pltpu.CompilerParams(
            dimension_semantics=("parallel",),                     # shards v7x's 2 TCs
            vmem_limit_bytes=vmem_limit,
        ),
        cost_estimate=cost,
    )(x, A, mask_flat, W3, b2)

    # (Fout, Bp*N) -> (B, N, Fout): one plain XLA transpose outside the kernel.
    y = out.reshape(Fout, Bp, N)[:, :B, :]
    return jnp.transpose(y, (1, 2, 0))


def chebygin_reference(x, A, mask, W, b, *, K=3, aggregation="mean"):
    """Pure-JAX reference mirroring the PyTorch forward."""
    B, N, F = x.shape
    add_identity = K == 1
    if add_identity:
        A = A + jnp.eye(N, dtype=A.dtype)[None]
    D = jnp.sum(A, axis=1)                                 # (B, N)
    D_hat = (D + 1e-5) ** -0.5
    L = D_hat[:, :, None] * A * D_hat[:, None, :]
    if not add_identity:
        L = -L
    if K == 1:
        Xt = [jnp.einsum("bij,bjf->bif", L, x)]
    else:
        Xt = [x, jnp.einsum("bij,bjf->bif", L, x)]
        for k in range(2, K):
            Xt.append(2.0 * jnp.einsum("bij,bjf->bif", L, Xt[-1]) - Xt[-2])
    y = jnp.stack(Xt, axis=2)                              # (B, N, K, F)
    if aggregation == "sum":
        if K == 1:
            y = y * D[:, :, None, None]
        else:
            D_GIN = jnp.concatenate(
                [jnp.ones((B, N, 1)), jnp.broadcast_to(D[:, :, None], (B, N, K - 1))],
                axis=2,
            )
            y = y * D_GIN[:, :, :, None]
    y = y.reshape(B, N, K * F)
    y = jnp.maximum(y @ W.T + b, 0.0)
    if mask.ndim == 2:
        mask = mask[:, :, None]
    return y * mask.astype(y.dtype)


if __name__ == "__main__":
    B, N, F, Fout = 32, 16, 8, 32                          # auto tile -> Bt=16, grid=(2,)

    key = jax.random.PRNGKey(0)
    kx, ka = jax.random.split(key, 2)

    x = jax.random.normal(kx, (B, N, F), dtype=jnp.float32)

    # Symmetric non-negative adjacency (typical graph input), no self-loops.
    A_raw = jax.random.uniform(ka, (B, N, N), dtype=jnp.float32)
    A = 0.5 * (A_raw + jnp.transpose(A_raw, (0, 2, 1)))
    A = A * (1.0 - jnp.eye(N, dtype=jnp.float32)[None])

    # Node mask: last two nodes of each graph are padding.
    mask = jnp.concatenate(
        [jnp.ones((B, N - 2), jnp.float32), jnp.zeros((B, 2), jnp.float32)], axis=1
    )

    for K, agg in ((3, "mean"), (3, "sum"), (1, "sum")):
        # fc parameters: Linear(in=F*K, out=Fout), uniform(-bound, bound) like torch.
        n_in = F * K
        bound = 1.0 / np.sqrt(n_in)
        kw, kb = jax.random.split(jax.random.fold_in(key, 17 * K + (agg == "sum")), 2)
        W = jax.random.uniform(kw, (Fout, n_in), minval=-bound, maxval=bound,
                               dtype=jnp.float32)
        b = jax.random.uniform(kb, (Fout,), minval=-bound, maxval=bound,
                               dtype=jnp.float32)

        y = chebygin_layer(x, A, mask, W, b, K=K, aggregation=agg)
        y = jax.block_until_ready(y)
        y_ref = chebygin_reference(x, A, mask, W, b, K=K, aggregation=agg)
        np.testing.assert_allclose(np.asarray(y), np.asarray(y_ref),
                                   rtol=1e-5, atol=1e-4)

    print("KERNEL_OK")
</pallas_src>

<mosaic_0001>
module attributes {stable_mosaic.version = 11 : i64} {
  func.func @kernel(%arg0: i32, %arg1: memref<16x16x8xf32, #tpu.memory_space<vmem>>, %arg2: memref<16x16x16xf32, #tpu.memory_space<vmem>>, %arg3: memref<1x256xf32, #tpu.memory_space<vmem>>, %arg4: memref<3x32x8xf32, #tpu.memory_space<vmem>>, %arg5: memref<32x1xf32, #tpu.memory_space<vmem>>, %arg6: memref<32x256xf32, #tpu.memory_space<vmem>>) attributes {dimension_semantics = [#tpu.dimension_semantics<parallel>], iteration_bounds = array<i64: 2>, scalar_prefetch = 0 : i64, scratch_operands = 0 : i64, tpu.core_type = #tpu.core_type<tc>, window_params = [{transform_indices = @transform_0, window_bounds = array<i64: 16, 16, 8>}, {transform_indices = @transform_1, window_bounds = array<i64: 16, 16, 16>}, {transform_indices = @transform_2, window_bounds = array<i64: 1, 256>}, {pipeline_mode = #tpu.pipeline_mode<synchronous>, transform_indices = @transform_3, window_bounds = array<i64: 3, 32, 8>}, {pipeline_mode = #tpu.pipeline_mode<synchronous>, transform_indices = @transform_4, window_bounds = array<i64: 32, 1>}, {transform_indices = @transform_5, window_bounds = array<i64: 32, 256>}]} {
    %c0 = arith.constant 0 : index
    %c0_0 = arith.constant 0 : index
    %c0_1 = arith.constant 0 : index
    %0 = vector.load %arg2[%c0, %c0_0, %c0_1] : memref<16x16x16xf32, #tpu.memory_space<vmem>>, vector<16x16x16xf32>
    %c0_2 = arith.constant 0 : index
    %c0_3 = arith.constant 0 : index
    %c0_4 = arith.constant 0 : index
    %1 = vector.load %arg1[%c0_2, %c0_3, %c0_4] : memref<16x16x8xf32, #tpu.memory_space<vmem>>, vector<16x16x8xf32>
    %cst = arith.constant dense<0.000000e+00> : vector<16x16xf32>
    %2 = vector.multi_reduction <add>, %0, %cst [1] : vector<16x16x16xf32> to vector<16x16xf32>
    %cst_5 = arith.constant 9.99999974E-6 : f32
    %3 = vector.broadcast %cst_5 : f32 to vector<16x16xf32>
    %4 = arith.addf %2, %3 : vector<16x16xf32>
    %5 = math.rsqrt %4 : vector<16x16xf32>
    %cst_6 = arith.constant 0.000000e+00 : f32
    %6 = vector.broadcast %cst_6 : f32 to vector<16x16xf32>
    %7 = arith.subf %6, %5 : vector<16x16xf32>
    %8 = vector.shape_cast %7 : vector<16x16xf32> to vector<16x16x1xf32>
    %9 = vector.broadcast %8 : vector<16x16x1xf32> to vector<16x16x16xf32>
    %10 = arith.mulf %9, %0 : vector<16x16x16xf32>
    %11 = vector.shape_cast %5 : vector<16x16xf32> to vector<16x1x16xf32>
    %12 = vector.broadcast %11 : vector<16x1x16xf32> to vector<16x16x16xf32>
    %13 = arith.mulf %10, %12 : vector<16x16x16xf32>
    "tpu.trace_start"() <{level = 10 : i32, message = "bij,bjf->bif"}> : () -> ()
    %cst_7 = arith.constant dense<0.000000e+00> : vector<16x16x8xf32>
    %14 = tpu.matmul %13, %1, %cst_7 {dimension_numbers = #tpu.dot_dimension_numbers<[2], [1], [1], [2], [0, 0, 0, 1, 1, 2], [0], [0]>} : vector<16x16x16xf32>, vector<16x16x8xf32>, vector<16x16x8xf32> -> vector<16x16x8xf32>
    "tpu.trace_stop"() : () -> ()
    %cst_8 = arith.constant 2.000000e+00 : f32
    %15 = vector.broadcast %cst_8 : f32 to vector<16x16x16xf32>
    %16 = arith.mulf %15, %13 : vector<16x16x16xf32>
    "tpu.trace_start"() <{level = 10 : i32, message = "bij,bjf->bif"}> : () -> ()
    %cst_9 = arith.constant dense<0.000000e+00> : vector<16x16x8xf32>
    %17 = tpu.matmul %16, %14, %cst_9 {dimension_numbers = #tpu.dot_dimension_numbers<[2], [1], [1], [2], [0, 0, 0, 1, 1, 2], [0], [0]>} : vector<16x16x16xf32>, vector<16x16x8xf32>, vector<16x16x8xf32> -> vector<16x16x8xf32>
    "tpu.trace_stop"() : () -> ()
    %18 = arith.subf %17, %1 : vector<16x16x8xf32>
    %c0_10 = arith.constant 0 : index
    %c0_11 = arith.constant 0 : index
    %c0_12 = arith.constant 0 : index
    %19 = vector.load %arg4[%c0_10, %c0_11, %c0_12] : memref<3x32x8xf32, #tpu.memory_space<vmem>>, vector<1x32x8xf32>
    %20 = vector.shape_cast %19 : vector<1x32x8xf32> to vector<32x8xf32>
    %21 = vector.shape_cast %1 : vector<16x16x8xf32> to vector<256x8xf32>
    %cst_13 = arith.constant dense<0.000000e+00> : vector<32x256xf32>
    %22 = tpu.matmul %20, %21, %cst_13 {dimension_numbers = #tpu.dot_dimension_numbers<[1], [1], [0], [0], [0, 0, 1, 0], [], []>} : vector<32x8xf32>, vector<256x8xf32>, vector<32x256xf32> -> vector<32x256xf32>
    %c1 = arith.constant 1 : index
    %c0_14 = arith.constant 0 : index
    %c0_15 = arith.constant 0 : index
    %23 = vector.load %arg4[%c1, %c0_14, %c0_15] : memref<3x32x8xf32, #tpu.memory_space<vmem>>, vector<1x32x8xf32>
    %24 = vector.shape_cast %23 : vector<1x32x8xf32> to vector<32x8xf32>
    %25 = vector.shape_cast %14 : vector<16x16x8xf32> to vector<256x8xf32>
    %cst_16 = arith.constant dense<0.000000e+00> : vector<32x256xf32>
    %26 = tpu.matmul %24, %25, %cst_16 {dimension_numbers = #tpu.dot_dimension_numbers<[1], [1], [0], [0], [0, 0, 1, 0], [], []>} : vector<32x8xf32>, vector<256x8xf32>, vector<32x256xf32> -> vector<32x256xf32>
    %27 = arith.addf %22, %26 : vector<32x256xf32>
    %c2 = arith.constant 2 : index
    %c0_17 = arith.constant 0 : index
    %c0_18 = arith.constant 0 : index
    %28 = vector.load %arg4[%c2, %c0_17, %c0_18] : memref<3x32x8xf32, #tpu.memory_space<vmem>>, vector<1x32x8xf32>
    %29 = vector.shape_cast %28 : vector<1x32x8xf32> to vector<32x8xf32>
    %30 = vector.shape_cast %18 : vector<16x16x8xf32> to vector<256x8xf32>
    %cst_19 = arith.constant dense<0.000000e+00> : vector<32x256xf32>
    %31 = tpu.matmul %29, %30, %cst_19 {dimension_numbers = #tpu.dot_dimension_numbers<[1], [1], [0], [0], [0, 0, 1, 0], [], []>} : vector<32x8xf32>, vector<256x8xf32>, vector<32x256xf32> -> vector<32x256xf32>
    %32 = arith.addf %27, %31 : vector<32x256xf32>
    %c0_20 = arith.constant 0 : index
    %c0_21 = arith.constant 0 : index
    %33 = vector.load %arg5[%c0_20, %c0_21] : memref<32x1xf32, #tpu.memory_space<vmem>>, vector<32x1xf32>
    %34 = vector.broadcast %33 : vector<32x1xf32> to vector<32x256xf32>
    %35 = arith.addf %32, %34 : vector<32x256xf32>
    %cst_22 = arith.constant 0.000000e+00 : f32
    %36 = vector.broadcast %cst_22 : f32 to vector<32x256xf32>
    %37 = arith.maximumf %35, %36 : vector<32x256xf32>
    %c0_23 = arith.constant 0 : index
    %c0_24 = arith.constant 0 : index
    %38 = vector.load %arg3[%c0_23, %c0_24] : memref<1x256xf32, #tpu.memory_space<vmem>>, vector<1x256xf32>
    %39 = vector.broadcast %38 : vector<1x256xf32> to vector<32x256xf32>
    %40 = arith.mulf %37, %39 : vector<32x256xf32>
    %c0_25 = arith.constant 0 : index
    %c0_26 = arith.constant 0 : index
    %41 = vector.load %arg6[%c0_25, %c0_26] : memref<32x256xf32, #tpu.memory_space<vmem>>, vector<32x256xf32>
    tpu.vector_store %arg6[%c0_25, %c0_26], %40 {strides = array<i32>} : memref<32x256xf32, #tpu.memory_space<vmem>>, vector<32x256xf32>,
    return
  }
  func.func @transform_0(%arg0: i32) -> (i32, i32, i32) {
    %c0_i32 = arith.constant 0 : i32
    %c0_i32_0 = arith.constant 0 : i32
    %c0_i32_1 = arith.constant 0 : i32
    return %arg0, %c0_i32, %c0_i32_0 : i32, i32, i32
  }
  func.func @transform_1(%arg0: i32) -> (i32, i32, i32) {
    %c0_i32 = arith.constant 0 : i32
    %c0_i32_0 = arith.constant 0 : i32
    %c0_i32_1 = arith.constant 0 : i32
    return %arg0, %c0_i32, %c0_i32_0 : i32, i32, i32
  }
  func.func @transform_2(%arg0: i32) -> (i32, i32) {
    %c0_i32 = arith.constant 0 : i32
    %c0_i32_0 = arith.constant 0 : i32
    return %c0_i32, %arg0 : i32, i32
  }
  func.func @transform_3(%arg0: i32) -> (i32, i32, i32) {
    %c0_i32 = arith.constant 0 : i32
    %c0_i32_0 = arith.constant 0 : i32
    %c0_i32_1 = arith.constant 0 : i32
    %c0_i32_2 = arith.constant 0 : i32
    return %c0_i32, %c0_i32_0, %c0_i32_1 : i32, i32, i32
  }
  func.func @transform_4(%arg0: i32) -> (i32, i32) {
    %c0_i32 = arith.constant 0 : i32
    %c0_i32_0 = arith.constant 0 : i32
    %c0_i32_1 = arith.constant 0 : i32
    return %c0_i32, %c0_i32_0 : i32, i32
  }
  func.func @transform_5(%arg0: i32) -> (i32, i32) {
    %c0_i32 = arith.constant 0 : i32
    %c0_i32_0 = arith.constant 0 : i32
    return %c0_i32, %arg0 : i32, i32
  }
}

</mosaic_0001>

<bundles_post_ra>
// kernel: tpu_custom_call.1
= control target key start
LH: loop header
LB: loop body
LE: loop exit
PB: predicated region body
PF: predicated region fallthrough
CT: control target
= control target key end

     0   :  { %10 = vsyncpa [#allocation3], 0  ;;  %s6389_s0 = inlined_call_operand.vmem [shape: f32[32,16,8], index: 0, kind: input, shape index: {}]   ;;  %s6390_s1 = inlined_call_operand.vmem [shape: f32[32,16,16], index: 1, kind: input, shape index: {}]   ;;  %s6391_s2 = inlined_call_operand.vmem [shape: f32[1,512], index: 2, kind: input, shape index: {}]   ;;  %s6392_s3 = inlined_call_operand.vmem [shape: f32[3,32,8], index: 3, kind: input, shape index: {}]   ;;  %s6393_s4 = inlined_call_operand.vmem [shape: f32[32,1], index: 4, kind: input, shape index: {}]   ;;  %s6394_s5 = inlined_call_operand.hbm [shape: f32[32,512], index: 5, kind: output, shape index: {}]  }
   0x1   :  { %12 = vsyncpa [#allocation3 + $0x1], 0  ;;  %s5301_s18 = smov 0   ;;  %s5303_s19 = smov 0  }
   0x2   :  { %s5305_s20 = smov 0   ;;  %s5307_s21 = smov 0  }
   0x3 LB: > { %s5322_s22 = sadd.s32 4294967295, %s5264_s21   ;;  %s4141_s23 = sadd.s32 4294967294, %s5264_s21   ;;  %s5264_s21 = sphi %s5307_s21, %s6471_s21   ;;  %s5260_s20 = sphi %s5305_s20, %s6470_s20   ;;  %s5256_s19 = sphi %s5303_s19, %s6469_s19   ;;  %s5252_s18 = sphi %s5301_s18, %s6468_s18  }
   0x4   : > { %s5326_s24 = sadd.s32 1, %s5264_s21   ;;  %s145_s25 = sadd.s32 1, %s5260_s20 }
   0x5   : > { %s142_s26 = ssub.s32 %s5264_s21, %s5326_s24  ;;  %p155_p0 = scmp.ne.s32.totalorder %s5260_s20, %s5256_s19 }
   0x6   : > { %p143_p1 = scmp.eq.s32.totalorder %s142_s26, 0  ;;  %p156_p2 = scmp.eq.s32.totalorder %s5322_s22, 1 }
   0x7   : > { %p161_p3 = scmp.ne.s32.totalorder %s5256_s19, %s5252_s18  ;;  %p162_p4 = scmp.eq.s32.totalorder %s4141_s23, 1 }
   0x8   : > { %s5337_s27 = scalar_select %p143_p1, %s5260_s20, %s145_s25  }
   0x9   : > { %p5339_p5 = por %p156_p2, %p155_p0  ;;  %p5343_p6 = por %p162_p4, %p161_p3 }
   0xa   : > { %p4144_p7 = scmp.ge.s32.totalorder %s5264_s21, 1  ;;  %p214_p8 = scmp.lt.s32.totalorder %s5264_s21, 3 }
   0xc   : > { %p215_p9 = pnand %p4144_p7, %p214_p8 }
   0xe   : > { %218 = sbr.rel (%p215_p9) target bundleno = 948 (0x3b4), region = 40 }
  0x15   : > { %s4146_s30 = sshll.u32 %s5322_s22, 4  ;;  %vm337_vm0 = vcmask 130048   ;;  %vm3371_vm1 = vcmask 64512   ;;  %s4152_s14 = sshll.u32 %s5322_s22, 1 }
  0x16   : > { %p254_p10 = scmp.lt.s32.totalorder %s4146_s30, 31  ;;  %vm6037_vm2 = vmpackc.low %vm3371_vm1, %vm3371_vm1  ;;  %p268_p11 = scmp.lt.s32.totalorder %s4152_s14, 3 }
  0x17   : > { %s250_s23 = sand.u32 1, %s5256_s19   ;;  %s5267_s10 = smov [#allocation2]  }
  0x18   : > { %s6473_s30 = smov (!%p254_p10, %s4146_s30), 31  ;;  %s6475_s14 = smov (!%p268_p11, %s4152_s14), 3 }
  0x19   : > { %s4338_s6 = sshll.u32 %s6473_s30, 4  ;;  %s270_s17 = scalar_lea.vmem %s6391_s2, %s6475_s14 }
  0x1a   : > { %s5358_s9 = scalar_lea.vmem %s6390_s1, %s4338_s6  ;;  %s5521_s12 = scalar_lea.vmem %s6389_s0, %s4338_s6 }
  0x1b   : > { %v5361_v0 = vld [vmem:[%s5358_s9 + $0x20] sm:$0xff]  ;;  %v5364_v1 = vld [vmem:[%s5358_s9 + $0x28] sm:$0xff]  ;;  %v5391_v13 = vld [vmem:[%s5358_s9 + $0x10] sm:$0xff]  ;;  %s4145_s25 = sshll.u32 %s250_s23, 6  ;;  %s4340_s6 = sshll.u32 %s5322_s22, 8 }
  0x1c   : > { %v5367_v2 = vld [vmem:[%s5358_s9] sm:$0xff]  ;;  %v356_v3 = vsel %vm337_vm0, %v5361_v0, 0.0  ;;  %v357_v4 = vsel %vm337_vm0, %v5364_v1, 0.0  ;;  %v5374_v5 = vld [vmem:[%s5358_s9 + $0x8] sm:$0xff]  ;;  %v5394_v14 = vld [vmem:[%s5358_s9 + $0x18] sm:$0xff]  ;;  %v347_v18 = vsel %vm337_vm0, %v5391_v13, 0.0  ;;  %s6344_s22 = scalar_lea.hbm %s6394_s5, %s4340_s6 }
  0x1d   : > { %v338_v6 = vsel %vm337_vm0, %v5367_v2, 0.0  ;;  %v5379_v7 = vld [vmem:[%s5358_s9 + $0x40] sm:$0xff]  ;;  %v5382_v8 = vld [vmem:[%s5358_s9 + $0x48] sm:$0xff]  ;;  %v358_v9 = vadd.f32 %v357_v4, %v356_v3  ;;  %v339_v10 = vsel %vm337_vm0, %v5374_v5, 0.0  ;;  %v348_v19 = vsel %vm337_vm0, %v5394_v14, 0.0  ;;  %v5407_v21 = vld [vmem:[%s5358_s9 + $0x30] sm:$0xff] }
  0x1e   : > { %v374_v11 = vsel %vm337_vm0, %v5379_v7, 0.0  ;;  %v375_v12 = vsel %vm337_vm0, %v5382_v8, 0.0  ;;  %v5397_v15 = vld [vmem:[%s5358_s9 + $0x60] sm:$0xff]  ;;  %v340_v16 = vadd.f32 %v339_v10, %v338_v6  ;;  %v5404_v20 = vld [vmem:[%s5358_s9 + $0x68] sm:$0xff]  ;;  %v5410_v22 = vld [vmem:[%s5358_s9 + $0x38] sm:$0xff]  ;;  %v349_v24 = vadd.f32 %v348_v19, %v347_v18  ;;  %s252_s26 = scalar_lea.vmem [#allocation2], %s4145_s25 }
  0x1f   : > { %v376_v17 = vadd.f32 %v375_v12, %v374_v11  ;;  %v359_v23 = vrot.slane %v358_v9, 4  ;;  %v392_v25 = vsel %vm337_vm0, %v5397_v15, 0.0  ;;  %v393_v26 = vsel %vm337_vm0, %v5404_v20, 0.0  ;;  %v5417_v27 = vld [vmem:[%s5358_s9 + $0x80] sm:$0xff]  ;;  %v5422_v32 = vld [vmem:[%s5358_s9 + $0x88] sm:$0xff]  ;;  %v5425_v33 = vld [vmem:[%s5358_s9 + $0x50] sm:$0xff] }
  0x20   : > { %v341_v28 = vrot.slane %v340_v16, 4  ;;  %v394_v30 = vadd.f32 %v393_v26, %v392_v25  ;;  %v365_v31 = vsel %vm337_vm0, %v5407_v21, 0.0  ;;  %v350_v35 = vrot.slane %v349_v24, 4  ;;  %v5432_v42 = vld [vmem:[%s5358_s9 + $0x58] sm:$0xff]  ;;  %s4058_s30 = sshll.u32 %s252_s26, 4  ;;  %s5206_s11 = sshll.u32 %s5267_s10, 4  ;;  %s6339_s30 = int_to_ptr.vmem [resolvable:$true] %s4058_s30  ;;  %s5207_s11 = int_to_ptr.vmem [resolvable:$false] %s5206_s11 }
  0x21   : > { %v377_v29 = vrot.slane %v376_v17, 4  ;;  %v360_v34 = vadd.f32 %v359_v23, %v358_v9  ;;  %v366_v36 = vsel %vm337_vm0, %v5410_v22, 0.0  ;;  %v410_v37 = vsel %vm337_vm0, %v5417_v27, 0.0  ;;  %s5208_s13 = scalar_lea.vmem %s5207_s11, 2048  ;;  %p5209_p1 = scmp.lt.s32.totalorder %s6339_s30, %s5207_s11 }
  0x22   : > { %v342_v38 = vadd.f32 %v341_v28, %v340_v16  ;;  %v395_v40 = vrot.slane %v394_v30, 4  ;;  %v367_v41 = vadd.f32 %v366_v36, %v365_v31  ;;  %v351_v44 = vadd.f32 %v350_v35, %v349_v24  ;;  %v5441_v28 = vld [vmem:[%s5358_s9 + $0x70] sm:$0xff]  ;;  %v5444_v31 = vld [vmem:[%s5358_s9 + $0x78] sm:$0xff] }
  0x23   : > { %v378_v39 = vadd.f32 %v377_v29, %v376_v17  ;;  %v361_v43 = vrot.slane %v360_v34, 2  ;;  %v411_v45 = vsel %vm337_vm0, %v5422_v32, 0.0  ;;  %v383_v46 = vsel %vm337_vm0, %v5425_v33, 0.0 }
  0x24   : > { %v343_v47 = vrot.slane %v342_v38, 2  ;;  %v396_v49 = vadd.f32 %v395_v40, %v394_v30  ;;  %v368_v50 = vrot.slane %v367_v41, 4  ;;  %v352_v52 = vrot.slane %v351_v44, 2 }
  0x25   : > { %v379_v48 = vrot.slane %v378_v39, 2  ;;  %v362_v51 = vadd.f32 %v361_v43, %v360_v34  ;;  %v412_v53 = vadd.f32 %v411_v45, %v410_v37  ;;  %v384_v54 = vsel %vm337_vm0, %v5432_v42, 0.0  ;;  %v5447_v37 = vld [vmem:[%s5358_s9 + $0x90] sm:$0xff] }
  0x26   : > { %v344_v55 = vadd.f32 %v343_v47, %v342_v38  ;;  %v397_v57 = vrot.slane %v396_v49, 2  ;;  %v369_v58 = vadd.f32 %v368_v50, %v367_v41  ;;  %v353_v60 = vadd.f32 %v352_v52, %v351_v44  ;;  %v5457_v44 = vld [vmem:[%s5358_s9 + $0xa0] sm:$0xff]  ;;  %v5462_v47 = vld [vmem:[%s5358_s9 + $0xa8] sm:$0xff]  ;;  %v5470_v52 = vld [vmem:[%s5358_s9 + $0xb8] sm:$0xff] }
  0x27   : > { %v380_v56 = vadd.f32 %v379_v48, %v378_v39  ;;  %v363_v59 = vrot.slane %v362_v51, 1  ;;  %v413_v61 = vrot.slane %v412_v53, 4  ;;  %v385_v62 = vadd.f32 %v384_v54, %v383_v46  ;;  %v5452_v39 = vld [vmem:[%s5358_s9 + $0x98] sm:$0xff]  ;;  %v5465_v48 = vld [vmem:[%s5358_s9 + $0xb0] sm:$0xff] }
  0x28   : > { %v345_v63 = vrot.slane %v344_v55, 1  ;;  %v398_v4 = vadd.f32 %v397_v57, %v396_v49  ;;  %v370_v6 = vrot.slane %v369_v58, 2  ;;  %v354_v10 = vrot.slane %v353_v60, 1 }
  0x29   : > { %v381_v3 = vrot.slane %v380_v56, 1  ;;  %v364_v9 = vadd.f32 %v363_v59, %v362_v51  ;;  %v414_v11 = vadd.f32 %v413_v61, %v412_v53  ;;  %v386_v12 = vrot.slane %v385_v62, 4  ;;  %v5482_v61 = vld [vmem:[%s5358_s9 + $0xc8] sm:$0xff] }
  0x2a   : > { %v346_v16 = vadd.f32 %v345_v63, %v344_v55  ;;  %v399_v18 = vrot.slane %v398_v4, 1  ;;  %v371_v19 = vadd.f32 %v370_v6, %v369_v58  ;;  %v355_v24 = vadd.f32 %v354_v10, %v353_v60 }
  0x2b   : > { %v382_v17 = vadd.f32 %v381_v3, %v380_v56  ;;  %v484_v23 = vadd.f32 1e-05, %v364_v9  ;;  %v415_v25 = vrot.slane %v414_v11, 2  ;;  %v387_v26 = vadd.f32 %v386_v12, %v385_v62  ;;  %v5475_v56 = vld [vmem:[%s5358_s9 + $0xc0] sm:$0xff] }
  0x2c   : > { %v482_v29 = vadd.f32 1e-05, %v346_v16  ;;  %v483_v34 = vadd.f32 1e-05, %v355_v24  ;;  %v372_v35 = vrot.slane %v371_v19, 1  ;;  %v401_v38 = vsel %vm337_vm0, %v5441_v28, 0.0 }
  0x2d   : > { %v486_v30 = vadd.f32 1e-05, %v382_v17  ;;  %5162 = vrsqrt.f32 %v484_v23  ;;  %v388_v36 = vrot.slane %v387_v26, 2  ;;  %v400_v40 = vadd.f32 %v399_v18, %v398_v4 }
  0x2e   : > { %5164 = vrsqrt.f32 %v482_v29  ;;  %v416_v41 = vadd.f32 %v415_v25, %v414_v11  ;;  %v402_v43 = vsel %vm337_vm0, %v5444_v31, 0.0  ;;  %v419_v46 = vsel %vm337_vm0, %v5447_v37, 0.0  ;;  %v5493_v25 = vld [vmem:[%s5358_s9 + $0xd0] sm:$0xff] }
  0x2f   : > { %5166 = vrsqrt.f32 %v486_v30  ;;  %v403_v45 = vadd.f32 %v402_v43, %v401_v38  ;;  %v373_v49 = vadd.f32 %v372_v35, %v371_v19  ;;  %v389_v50 = vadd.f32 %v388_v36, %v387_v26  ;;  %6420 = vst [vmem:[#allocation5_spill] sm:$0xff] %v5493_v25  ;;  %v5496_v26 = vld [vmem:[%s5358_s9 + $0xd8] sm:$0xff] }
  0x30   : > { %5168 = vrsqrt.f32 %v483_v34  ;;  %v420_v51 = vsel %vm337_vm0, %v5452_v39, 0.0  ;;  %v428_v55 = vsel %vm337_vm0, %v5457_v44, 0.0  ;;  %v488_v57 = vadd.f32 1e-05, %v400_v40  ;;  %6421 = vst [vmem:[#allocation6_spill] sm:$0xff] %v5496_v26 }
  0x31   : > { %v404_v53 = vrot.slane %v403_v45, 4  ;;  %v421_v54 = vadd.f32 %v420_v51, %v419_v46  ;;  %v417_v58 = vrot.slane %v416_v41, 1  ;;  %v429_v59 = vsel %vm337_vm0, %v5462_v47, 0.0 }
  0x32   : > { %v437_v60 = vsel %vm337_vm0, %v5465_v48, 0.0  ;;  %v430_v3 = vadd.f32 %v429_v59, %v428_v55  ;;  %v438_v4 = vsel %vm337_vm0, %v5470_v52, 0.0  ;;  %v485_v6 = vadd.f32 1e-05, %v373_v49 }
  0x33   : > { %v405_v62 = vadd.f32 %v404_v53, %v403_v45  ;;  %v422_v63 = vrot.slane %v421_v54, 4  ;;  %v390_v9 = vrot.slane %v389_v50, 1  ;;  %v439_v10 = vadd.f32 %v438_v4, %v437_v60 }
  0x34   : > { %v446_v11 = vsel %vm337_vm0, %v5475_v56, 0.0  ;;  %v431_v17 = vrot.slane %v430_v3, 4  ;;  %v447_v18 = vsel %vm337_vm0, %v5482_v61, 0.0  ;;  %5170 = vrsqrt.f32 %v488_v57 }
  0x35   : > { %v406_v12 = vrot.slane %v405_v62, 2  ;;  %v423_v16 = vadd.f32 %v422_v63, %v421_v54  ;;  %v440_v23 = vrot.slane %v439_v10, 4  ;;  %v448_v24 = vadd.f32 %v447_v18, %v446_v11  ;;  %v305_v18 = vld [vmem:[%s5521_s12] sm:$0xff] }
  0x36   : > { %v418_v38 = vadd.f32 %v417_v58, %v416_v41  ;;  %v432_v40 = vadd.f32 %v431_v17, %v430_v3  ;;  %5172 = vrsqrt.f32 %v485_v6  ;;  %v391_v45 = vadd.f32 %v390_v9, %v389_v50  ;;  %v5511_v41 = vld [vmem:[%s5358_s9 + $0xe0] sm:$0xff]  ;;  %v5514_v58 = vld [vmem:[%s5358_s9 + $0xe8] sm:$0xff]  ;;  %v5533_v17 = vld [vmem:[%s5358_s9 + $0xf8] sm:$0xff] }
  0x37   : > { %v5490_v19 = vpop.eup %5162  ;;  %v407_v34 = vadd.f32 %v406_v12, %v405_v62  ;;  %v424_v35 = vrot.slane %v423_v16, 2  ;;  %v455_v46 = vsel %vm337_vm0, %v5493_v25, 0.0  ;;  %v456_v49 = vsel %vm337_vm0, %v5496_v26, 0.0  ;;  %6422 = vst [vmem:[#allocation7_spill] sm:$0xff] %v5511_v41  ;;  %6423 = vst [vmem:[#allocation8_spill] sm:$0xff] %v5514_v58 }
  0x38   : > { %v5498_v29 = vpop.eup %5164  ;;  %v516_v30 = vsub.f32 0.0, %v5490_v19  ;;  %v441_v54 = vadd.f32 %v440_v23, %v439_v10  ;;  %v449_v55 = vrot.slane %v448_v24, 4  ;;  %v490_v59 = vadd.f32 1e-05, %v418_v38  ;;  %v306_v38 = vld [vmem:[%s5521_s12 + $0x8] sm:$0xff] }
  0x39   : > { %v514_v36 = vsub.f32 0.0, %v5498_v29  ;;  %v5502_v43 = vpop.eup %5166  ;;  %v408_v53 = vrot.slane %v407_v34, 1  ;;  %v425_v57 = vadd.f32 %v424_v35, %v423_v16  ;;  %v433_v50 = vrot.slane %v432_v40, 2  ;;  %v5530_v16 = vld [vmem:[%s5358_s9 + $0xf0] sm:$0xff]  ;;  %s6348_s9 = scalar_lea.sflag [#allocation3], %s250_s23 }
  0x3a   : > { %545 = vbcast.lane.b32.xlu1 %v516_v30, 256  ;;  %v5508_v51 = vpop.eup %5168  ;;  %v457_v60 = vadd.f32 %v456_v49, %v455_v46  ;;  %v518_v62 = vsub.f32 0.0, %v5502_v43  ;;  %v487_v3 = vadd.f32 1e-05, %v391_v45  ;;  %v464_v4 = vsel %vm337_vm0, %v5511_v41, 0.0  ;;  %6424 = vst [vmem:[#allocation9_spill] sm:$0xff] %v5530_v16 }
  0x3b   : > { %531 = vbcast.lane.b32.xlu0 %v514_v36, 256  ;;  %v515_v63 = vsub.f32 0.0, %v5508_v51  ;;  %v409_v6 = vadd.f32 %v408_v53, %v407_v34  ;;  %v442_v9 = vrot.slane %v441_v54, 2  ;;  %v450_v10 = vadd.f32 %v449_v55, %v448_v24  ;;  %v310_v34 = vld [vmem:[%s5521_s12 + $0x28] sm:$0xff]  ;;  %v307_v24 = vld [vmem:[%s5521_s12 + $0x10] sm:$0xff] }
  0x3c   : > { %v465_v11 = vsel %vm337_vm0, %v5514_v58, 0.0  ;;  %v426_v12 = vrot.slane %v425_v57, 1  ;;  %5174 = vrsqrt.f32 %v490_v59  ;;  %v434_v23 = vadd.f32 %v433_v50, %v432_v40  ;;  %v308_v40 = vld [vmem:[%s5521_s12 + $0x18] sm:$0xff]  ;;  %v311_v41 = vld [vmem:[%s5521_s12 + $0x30] sm:$0xff] }
  0x3d   : > { %v466_v35 = vadd.f32 %v465_v11, %v464_v4  ;;  %5176 = vrsqrt.f32 %v487_v3  ;;  %v489_v46 = vadd.f32 1e-05, %v409_v6  ;;  %v443_v49 = vadd.f32 %v442_v9, %v441_v54  ;;  %v312_v58 = vld [vmem:[%s5521_s12 + $0x38] sm:$0xff] }
  0x3e   : > { %549 = vbcast.lane.b32.xlu1 %v516_v30, 264  ;;  %v458_v30 = vrot.slane %v457_v60, 4  ;;  %v5540_v45 = vpop.eup %5170  ;;  %v451_v53 = vrot.slane %v450_v10, 2  ;;  %v473_v55 = vsel %vm337_vm0, %v5530_v16, 0.0  ;;  %v427_v50 = vadd.f32 %v426_v12, %v425_v57 }
  0x3f   : > { %535 = vbcast.lane.b32.xlu0 %v514_v36, 264  ;;  %v309_v36 = vld [vmem:[%s5521_s12 + $0x20] sm:$0xff]  ;;  %v474_v4 = vsel %vm337_vm0, %v5533_v17, 0.0  ;;  %v5549_v11 = vpack.c.bf16 %v306_v38, %v305_v18  ;;  %v435_v25 = vrot.slane %v434_v23, 1  ;;  %v467_v54 = vrot.slane %v466_v35, 4 }
  0x40   : > { %v5545_v59 = vpop.eup %5172  ;;  %v5551_v3 = vpack.c.bf16 %v310_v34, %v309_v36  ;;  %v459_v6 = vadd.f32 %v458_v30, %v457_v60  ;;  %v520_v9 = vsub.f32 0.0, %v5540_v45  ;;  %v475_v16 = vadd.f32 %v474_v4, %v473_v55 }
  0x41   : > { %4814 = vmatprep.subr.bf16.mxu0 %v5549_v11  ;;  %v5557_v26 = vpack.c.bf16 %v308_v40, %v307_v24  ;;  %v517_v57 = vsub.f32 0.0, %v5545_v59  ;;  %v5561_v12 = vpack.c.bf16 %v312_v58, %v311_v41  ;;  %5178 = vrsqrt.f32 %v489_v46 }
  0x42   : > { %559 = vbcast.lane.b32.xlu1 %v518_v62, 256  ;;  %4816 = vmatpush3.bf16.msra.mxu0 %v5549_v11  ;;  %v491_v18 = vadd.f32 1e-05, %v427_v50  ;;  %v444_v38 = vrot.slane %v443_v49, 1  ;;  %v452_v60 = vadd.f32 %v451_v53, %v450_v10  ;;  %v460_v30 = vrot.slane %v459_v6, 2 }
  0x43   : > { %538 = vbcast.lane.b32.xlu0 %v515_v63, 256  ;;  %6425 = vst [vmem:[#allocation10_spill] sm:$0xff] %v5557_v26  ;;  %4822 = vmatprep.subr.bf16.mxu0 %v5551_v3  ;;  %v468_v36 = vadd.f32 %v467_v54, %v466_v35  ;;  %v476_v34 = vrot.slane %v475_v16, 4 }
  0x44   : > { %4818 = vmatprep.subr.bf16.mxu1 %v5557_v26  ;;  %5180 = vrsqrt.f32 %v491_v18  ;;  %v445_v58 = vadd.f32 %v444_v38, %v443_v49  ;;  %v453_v10 = vrot.slane %v452_v60, 1  ;;  %v461_v46 = vadd.f32 %v460_v30, %v459_v6 }
  0x45   : > { %4820 = vmatpush3.bf16.msra.mxu1 %v5557_v26  ;;  %v469_v53 = vrot.slane %v468_v36, 2 }
  0x46   : > { %563 = vbcast.lane.b32.xlu1 %v518_v62, 264  ;;  %v436_v62 = vadd.f32 %v435_v25, %v434_v23  ;;  %4826 = vmatprep.subr.bf16.mxu1 %v5561_v12  ;;  %v477_v25 = vadd.f32 %v476_v34, %v475_v16  ;;  %v493_v55 = vadd.f32 1e-05, %v445_v58  ;;  %v454_v40 = vadd.f32 %v453_v10, %v452_v60 }
  0x47   : > { %542 = vbcast.lane.b32.xlu0 %v515_v63, 264  ;;  %v5567_v63 = vpop.eup %5174  ;;  %v462_v50 = vrot.slane %v461_v46, 1  ;;  %v470_v4 = vadd.f32 %v469_v53, %v468_v36 }
  0x48   : > { %v5569_v41 = vpop.eup %5176  ;;  %v492_v24 = vadd.f32 1e-05, %v436_v62  ;;  %v522_v23 = vsub.f32 0.0, %v5567_v63  ;;  %v478_v54 = vrot.slane %v477_v25, 2  ;;  %v494_v49 = vadd.f32 1e-05, %v454_v40 }
  0x49   : > { %v519_v35 = vsub.f32 0.0, %v5569_v41  ;;  %v463_v6 = vadd.f32 %v462_v50, %v461_v46  ;;  %v471_v16 = vrot.slane %v470_v4, 1 }
  0x4a   : > { %573 = vbcast.lane.b32.xlu1 %v520_v9, 256  ;;  %5182 = vrsqrt.f32 %v492_v24 }
  0x4b   : > { %552 = vbcast.lane.b32.xlu0 %v517_v57, 256  ;;  %v5573_v26 = vpop.eup %5178  ;;  %5184 = vrsqrt.f32 %v493_v55  ;;  %v495_v38 = vadd.f32 1e-05, %v463_v6  ;;  %v472_v60 = vadd.f32 %v471_v16, %v470_v4 }
  0x4c   : > { %5186 = vrsqrt.f32 %v494_v49 }
  0x4d   : > { %5188 = vrsqrt.f32 %v495_v38  ;;  %v496_v34 = vadd.f32 1e-05, %v472_v60 }
  0x4e   : > { %577 = vbcast.lane.b32.xlu1 %v520_v9, 264  ;;  %v479_v9 = vadd.f32 %v478_v54, %v477_v25  ;;  %v5575_v18 = vpop.eup %5180 }
  0x4f   : > { %556 = vbcast.lane.b32.xlu0 %v517_v57, 264  ;;  %v521_v57 = vsub.f32 0.0, %v5573_v26  ;;  %v523_v30 = vsub.f32 0.0, %v5575_v18  ;;  %5190 = vrsqrt.f32 %v496_v34 }
  0x50   : > { %v480_v62 = vrot.slane %v479_v9, 1 }
  0x52   : > { %587 = vbcast.lane.b32.xlu1 %v522_v23, 256  ;;  %v481_v58 = vadd.f32 %v480_v62, %v479_v9  ;;  %v5603_v62 = vld [vmem:[%s5521_s12 + $0x40] sm:$0xff] }
  0x53   : > { %566 = vbcast.lane.b32.xlu0 %v519_v35, 256 }
  0x54   : > { %v5579_v36 = vpop.eup %5182  ;;  %v497_v46 = vadd.f32 1e-05, %v481_v58 }
  0x55   : > { %v5581_v10 = vpop.eup %5184  ;;  %v524_v24 = vsub.f32 0.0, %v5579_v36 }
  0x56   : > { %591 = vbcast.lane.b32.xlu1 %v522_v23, 264  ;;  %v525_v53 = vsub.f32 0.0, %v5581_v10  ;;  %v5585_v25 = vpop.eup %5186  ;;  %5192 = vrsqrt.f32 %v497_v46 }
  0x57   : > { %570 = vbcast.lane.b32.xlu0 %v519_v35, 264  ;;  %v526_v23 = vsub.f32 0.0, %v5585_v25  ;;  %v5588_v35 = vpop.eup %5188 }
  0x58   : > { %v527_v55 = vsub.f32 0.0, %v5588_v35 }
  0x59   : > { %v5591_v40 = vpop.eup %5190 }
  0x5a   : > { %584 = vbcast.lane.b32.xlu1 %v521_v57, 264  ;;  %v528_v50 = vsub.f32 0.0, %v5591_v40 }
  0x5b   : > { %580 = vbcast.lane.b32.xlu0 %v521_v57, 256 }
  0x5e   : > { %598 = vbcast.lane.b32.xlu1 %v523_v30, 264 }
  0x5f   : > { %594 = vbcast.lane.b32.xlu0 %v523_v30, 256  ;;  %v5606_v30 = vld [vmem:[%s5521_s12 + $0x48] sm:$0xff] }
  0x60   : > { %v5594_v4 = vpop.eup %5192  ;;  %v5617_v46 = vpack.c.bf16 %v5606_v30, %v5603_v62 }
  0x61   : > { %v529_v54 = vsub.f32 0.0, %v5594_v4 }
  0x62   : > { %605 = vbcast.lane.b32.xlu1 %v524_v24, 264 }
  0x63   : > { %601 = vbcast.lane.b32.xlu0 %v524_v24, 256 }
  0x66   : > { %612 = vbcast.lane.b32.xlu1 %v525_v53, 264 }
  0x67   : > { %608 = vbcast.lane.b32.xlu0 %v525_v53, 256 }
  0x6a   : > { %619 = vbcast.lane.b32.xlu1 %v526_v23, 264 }
  0x6b   : > { %615 = vbcast.lane.b32.xlu0 %v526_v23, 256  ;;  %v5624_v23 = vld [vmem:[%s5521_s12 + $0x60] sm:$0xff] }
  0x6e   : > { %626 = vbcast.lane.b32.xlu1 %v527_v55, 264 }
  0x6f   : > { %622 = vbcast.lane.b32.xlu0 %v527_v55, 256 }
  0x72   : > { %633 = vbcast.lane.b32.xlu1 %v528_v50, 264 }
  0x73   : > { %629 = vbcast.lane.b32.xlu0 %v528_v50, 256 }
  0x76   : > { %640 = vbcast.lane.b32.xlu1 %v529_v54, 264 }
  0x77   : > { %636 = vbcast.lane.b32.xlu0 %v529_v54, 256 }
  0xac   : > { %v546_v49 = vpop.permute.xlu1 %545 }
  0xad   : > { %v532_v6 = vpop.permute.xlu0 %531  ;;  %v646_v38 = vmul.f32 %v546_v49, %v5361_v0  ;;  %v5650_v49 = vld [vmem:[%s5521_s12 + $0x50] sm:$0xff] }
  0xae   : > { %v642_v16 = vmul.f32 %v532_v6, %v5367_v2  ;;  %6426 = vst [vmem:[#allocation11_spill] sm:$0xff] %v5650_v49 }
  0xaf   : > { %v5620_v0 = vmul.f32 %v5490_v19, %v646_v38  ;;  %v5657_v38 = vld [vmem:[%s5521_s12 + $0x80] sm:$0xff] }
  0xb0   : > { %v550_v9 = vpop.permute.xlu1 %549  ;;  %v5599_v57 = vmul.f32 %v5498_v29, %v642_v16  ;;  %6427 = vst [vmem:[#allocation12_spill] sm:$0xff] %v5657_v38 }
  0xb1   : > { %v536_v60 = vpop.permute.xlu0 %535  ;;  %v647_v2 = vmul.f32 %v550_v9, %v5364_v1  ;;  %v5627_v1 = vld [vmem:[%s5521_s12 + $0x68] sm:$0xff]  ;;  %v5654_v9 = vld [vmem:[%s5521_s12 + $0x58] sm:$0xff] }
  0xb2   : > { %v643_v34 = vmul.f32 %v536_v60, %v5374_v5  ;;  %4593 = vmatprep.mubr.msk.f32.mxu0 %vm337_vm0, %v5599_v57 }
  0xb4   : > { %v5613_v58 = vmul.f32 %v5498_v29, %v643_v34  ;;  %v560_v24 = vpop.permute.xlu1 %559 }
  0xb5   : > { %v650_v53 = vmul.f32 %v560_v24, %v5379_v7  ;;  %v539_v5 = vpop.permute.xlu0 %538  ;;  %v5639_v7 = vmul.f32 %v5490_v19, %v647_v2  ;;  %v5660_v19 = vld [vmem:[%s5521_s12 + $0x88] sm:$0xff] }
  0xb6   : > { %v644_v29 = vmul.f32 %v539_v5, %v5391_v13  ;;  %4594 = vmatmul.mubr.msk.f32.vlgmr.msra.gmra.mrb[0].mxu0 %vm337_vm0, %v5613_v58  ;;  %v5647_v13 = vpack.c.bf16 %v5627_v1, %v5624_v23 }
  0xb7   : > { %v5633_v55 = vmul.f32 %v5502_v43, %v650_v53  ;;  %4824 = vmatpush3.bf16.msra.mxu0 %v5551_v3  ;;  %4607 = vmatprep.mubr.msk.f32.mxu0 %vm337_vm0, %v5620_v0 }
  0xb8   : > { %v564_v50 = vpop.permute.xlu1 %563  ;;  %v5642_v54 = vmul.f32 %v5508_v51, %v644_v29  ;;  %4830 = vmatprep.subr.bf16.mxu0 %v5617_v46 }
  0xb9   : > { %v651_v6 = vmul.f32 %v564_v50, %v5382_v8  ;;  %v543_v16 = vpop.permute.xlu0 %542  ;;  %v5705_v50 = vld [vmem:[%s5521_s12 + $0xa8] sm:$0xff] }
  0xba   : > { %v645_v60 = vmul.f32 %v543_v16, %v5394_v14  ;;  %4600 = vmatprep.mubr.msk.f32.mxu1 %vm337_vm0, %v5642_v54  ;;  %4608 = vmatmul.mubr.msk.f32.vlgmr.msra.gmra.mrb[2].mxu0 %vm337_vm0, %v5639_v7  ;;  %v5679_v14 = vpack.c.bf16 %v5654_v9, %v5650_v49  ;;  %6429 = vst [vmem:[#allocation14_spill] sm:$0xff] %v5705_v50 }
  0xbb   : > { %v5668_v34 = vmul.f32 %v5502_v43, %v651_v6  ;;  %4832 = vmatpush3.bf16.msra.mxu0 %v5617_v46  ;;  %4621 = vmatprep.mubr.msk.f32.mxu0 %vm337_vm0, %v5633_v55  ;;  %v5683_v43 = vpack.c.bf16 %v5660_v19, %v5657_v38 }
  0xbc   : > { %v5674_v8 = vmul.f32 %v5508_v51, %v645_v60  ;;  %v574_v2 = vpop.permute.xlu1 %573  ;;  %4838 = vmatprep.subr.bf16.mxu0 %v5647_v13  ;;  %v5711_v60 = vld [vmem:[%s5521_s12 + $0x70] sm:$0xff] }
  0xbd   : > { %v654_v24 = vmul.f32 %v574_v2, %v5397_v15  ;;  %v553_v53 = vpop.permute.xlu0 %552  ;;  %6430 = vst [vmem:[#allocation15_spill] sm:$0xff] %v5711_v60  ;;  %v5714_v2 = vld [vmem:[%s5521_s12 + $0x78] sm:$0xff] }
  0xbe   : > { %v648_v51 = vmul.f32 %v553_v53, %v5407_v21  ;;  %4601 = vmatmul.mubr.msk.f32.vlgmr.msra.gmra.mrb[0].mxu1 %vm337_vm0, %v5674_v8  ;;  %4622 = vmatmul.mubr.msk.f32.vlgmr.msra.gmra.mrb[4].mxu0 %vm337_vm0, %v5668_v34  ;;  %v5702_v21 = vld [vmem:[%s5521_s12 + $0xa0] sm:$0xff]  ;;  %6431 = vst [vmem:[#allocation16_spill] sm:$0xff] %v5714_v2  ;;  %v5731_v49 = vpack.c.bf16 %v5714_v2, %v5711_v60 }
  0xbf   : > { %v5692_v5 = vmul.f32 %v5540_v45, %v654_v24  ;;  %4828 = vmatpush3.bf16.msra.mxu1 %v5561_v12  ;;  %4840 = vmatpush3.bf16.msra.mxu0 %v5647_v13  ;;  %6428 = vst [vmem:[#allocation13_spill] sm:$0xff] %v5702_v21 }
  0xc0   : > { %v5697_v15 = vmul.f32 %v5545_v59, %v648_v51  ;;  %v578_v29 = vpop.permute.xlu1 %577  ;;  %4834 = vmatprep.subr.bf16.mxu1 %v5679_v14  ;;  %4846 = vmatprep.subr.bf16.mxu0 %v5683_v43  ;;  %v5724_v51 = vpack.c.bf16 %v5705_v50, %v5702_v21  ;;  %v5762_v21 = vld [vmem:[%s5521_s12 + $0x98] sm:$0xff] }
  0xc1   : > { %v655_v6 = vmul.f32 %v578_v29, %v5404_v20  ;;  %v557_v16 = vpop.permute.xlu0 %556  ;;  %4635 = vmatprep.mubr.msk.f32.mxu0 %vm337_vm0, %v5692_v5 }
  0xc2   : > { %v649_v24 = vmul.f32 %v557_v16, %v5410_v22  ;;  %4614 = vmatprep.mubr.msk.f32.mxu1 %vm337_vm0, %v5697_v15 }
  0xc3   : > { %v5720_v53 = vmul.f32 %v5540_v45, %v655_v6 }
  0xc4   : > { %v5727_v20 = vmul.f32 %v5545_v59, %v649_v24  ;;  %v588_v29 = vpop.permute.xlu1 %587  ;;  %v5750_v24 = vld [vmem:[%s5521_s12 + $0xc0] sm:$0xff] }
  0xc5   : > { %v658_v22 = vmul.f32 %v588_v29, %v5417_v27  ;;  %v567_v16 = vpop.permute.xlu0 %566  ;;  %4636 = vmatmul.mubr.msk.f32.vlgmr.msra.gmra.mrb[6].mxu0 %vm337_vm0, %v5720_v53  ;;  %6432 = vst [vmem:[#allocation17_spill] sm:$0xff] %v5750_v24 }
  0xc6   : > { %v652_v45 = vmul.f32 %v567_v16, %v5425_v33  ;;  %4615 = vmatmul.mubr.msk.f32.vlgmr.msra.gmra.mrb[2].mxu1 %vm337_vm0, %v5727_v20  ;;  %4848 = vmatpush3.bf16.msra.mxu0 %v5683_v43  ;;  %v5753_v33 = vld [vmem:[%s5521_s12 + $0xc8] sm:$0xff] }
  0xc7   : > { %v5741_v59 = vmul.f32 %v5567_v63, %v658_v22  ;;  %4836 = vmatpush3.bf16.msra.mxu1 %v5679_v14  ;;  %4854 = vmatprep.subr.bf16.mxu0 %v5724_v51  ;;  %6433 = vst [vmem:[#allocation18_spill] sm:$0xff] %v5753_v33  ;;  %v5759_v22 = vld [vmem:[%s5521_s12 + $0x90] sm:$0xff] }
  0xc8   : > { %v5746_v27 = vmul.f32 %v5569_v41, %v652_v45  ;;  %v592_v6 = vpop.permute.xlu1 %591  ;;  %4842 = vmatprep.subr.bf16.mxu1 %v5731_v49  ;;  %6434 = vst [vmem:[#allocation19_spill] sm:$0xff] %v5759_v22  ;;  %v5779_v2 = vpack.c.bf16 %v5762_v21, %v5759_v22 }
  0xc9   : > { %v659_v29 = vmul.f32 %v592_v6, %v5422_v32  ;;  %v571_v16 = vpop.permute.xlu0 %570  ;;  %4649 = vmatprep.mubr.msk.f32.mxu0 %vm337_vm0, %v5741_v59  ;;  %v5772_v32 = vpack.c.bf16 %v5753_v33, %v5750_v24  ;;  %v5812_v24 = vld [vmem:[%s5521_s12 + $0xd0] sm:$0xff] }
  0xca   : > { %v653_v45 = vmul.f32 %v571_v16, %v5432_v42  ;;  %4628 = vmatprep.mubr.msk.f32.mxu1 %vm337_vm0, %v5746_v27  ;;  %6437 = vst [vmem:[#allocation22_spill] sm:$0xff] %v5812_v24 }
  0xcb   : > { %v5768_v50 = vmul.f32 %v5567_v63, %v659_v29  ;;  %v5792_v29 = vld [vmem:[%s5521_s12 + $0xb8] sm:$0xff] }
  0xcc   : > { %v5775_v6 = vmul.f32 %v5569_v41, %v653_v45  ;;  %v585_v60 = vpop.permute.xlu1 %584  ;;  %v5789_v41 = vld [vmem:[%s5521_s12 + $0xb0] sm:$0xff]  ;;  %6436 = vst [vmem:[#allocation21_spill] sm:$0xff] %v5792_v29 }
  0xcd   : > { %v581_v38 = vpop.permute.xlu0 %580  ;;  %v657_v42 = vmul.f32 %v585_v60, %v5444_v31  ;;  %4650 = vmatmul.mubr.msk.f32.vlgmr.msra.gmra.mrb[8].mxu0 %vm337_vm0, %v5768_v50  ;;  %6435 = vst [vmem:[#allocation20_spill] sm:$0xff] %v5789_v41  ;;  %v5806_v45 = vpack.c.bf16 %v5792_v29, %v5789_v41  ;;  %v6446_v29 = vld [vmem:[#allocation7_spill] sm:$0xff] }
  0xce   : > { %v656_v63 = vmul.f32 %v581_v38, %v5441_v28  ;;  %4629 = vmatmul.mubr.msk.f32.vlgmr.msra.gmra.mrb[4].mxu1 %vm337_vm0, %v5775_v6  ;;  %4856 = vmatpush3.bf16.msra.mxu0 %v5724_v51 }
  0xcf   : > { %v5795_v16 = vmul.f32 %v5573_v26, %v657_v42  ;;  %4844 = vmatpush3.bf16.msra.mxu1 %v5731_v49  ;;  %4862 = vmatprep.subr.bf16.mxu0 %v5772_v32 }
  0xd0   : > { %v5800_v28 = vmul.f32 %v5573_v26, %v656_v63  ;;  %v599_v31 = vpop.permute.xlu1 %598  ;;  %4850 = vmatprep.subr.bf16.mxu1 %v5779_v2  ;;  %v5815_v26 = vld [vmem:[%s5521_s12 + $0xd8] sm:$0xff] }
  0xd1   : > { %v595_v38 = vpop.permute.xlu0 %594  ;;  %v661_v60 = vmul.f32 %v599_v31, %v5452_v39  ;;  %6438 = vst [vmem:[#allocation23_spill] sm:$0xff] %v5815_v26  ;;  %v5830_v33 = vpack.c.bf16 %v5815_v26, %v5812_v24  ;;  %v5860_v26 = vld [vmem:[%s5521_s12 + $0xf0] sm:$0xff] }
  0xd2   : > { %v660_v42 = vmul.f32 %v595_v38, %v5447_v37  ;;  %4642 = vmatprep.mubr.msk.f32.mxu1 %vm337_vm0, %v5800_v28  ;;  %6441 = vst [vmem:[#allocation26_spill] sm:$0xff] %v5860_v26 }
  0xd3   : > { %v5818_v63 = vmul.f32 %v5575_v18, %v661_v60  ;;  %4643 = vmatmul.mubr.msk.f32.vlgmr.msra.gmra.mrb[6].mxu1 %vm337_vm0, %v5795_v16 }
  0xd4   : > { %v5823_v39 = vmul.f32 %v5575_v18, %v660_v42  ;;  %4852 = vmatpush3.bf16.msra.mxu1 %v5779_v2  ;;  %v606_v37 = vpop.permute.xlu1 %605  ;;  %v5836_v18 = vld [vmem:[%s5521_s12 + $0xe0] sm:$0xff]  ;;  %v5839_v42 = vld [vmem:[%s5521_s12 + $0xe8] sm:$0xff] }
  0xd5   : > { %v602_v31 = vpop.permute.xlu0 %601  ;;  %v663_v38 = vmul.f32 %v606_v37, %v5462_v47  ;;  %4858 = vmatprep.subr.bf16.mxu1 %v5806_v45  ;;  %6439 = vst [vmem:[#allocation24_spill] sm:$0xff] %v5836_v18  ;;  %6440 = vst [vmem:[#allocation25_spill] sm:$0xff] %v5839_v42  ;;  %v5854_v24 = vpack.c.bf16 %v5839_v42, %v5836_v18 }
  0xd6   : > { %v662_v60 = vmul.f32 %v602_v31, %v5457_v44  ;;  %4656 = vmatprep.mubr.msk.f32.mxu1 %vm337_vm0, %v5823_v39 }
  0xd7   : > { %v5842_v41 = vmul.f32 %v5579_v36, %v663_v38  ;;  %4657 = vmatmul.mubr.msk.f32.vlgmr.msra.gmra.mrb[8].mxu1 %vm337_vm0, %v5818_v63 }
  0xd8   : > { %v5847_v47 = vmul.f32 %v5579_v36, %v662_v60  ;;  %v613_v37 = vpop.permute.xlu1 %612  ;;  %4860 = vmatpush3.bf16.msra.mxu1 %v5806_v45  ;;  %v5863_v36 = vld [vmem:[%s5521_s12 + $0xf8] sm:$0xff] }
  0xd9   : > { %v609_v44 = vpop.permute.xlu0 %608  ;;  %v665_v31 = vmul.f32 %v613_v37, %v5470_v52  ;;  %4866 = vmatprep.subr.bf16.mxu1 %v5830_v33  ;;  %6442 = vst [vmem:[#allocation27_spill] sm:$0xff] %v5863_v36  ;;  %v5878_v18 = vpack.c.bf16 %v5863_v36, %v5860_v26  ;;  %v6443_v26 = vld [vmem:[#allocation6_spill] sm:$0xff] }
  0xda   : > { %v664_v38 = vmul.f32 %v609_v44, %v5465_v48  ;;  %4663 = vmatprep.mubr.msk.f32.mxu0 %vm337_vm0, %v5847_v47 }
  0xdb   : > { %v5866_v60 = vmul.f32 %v5581_v10, %v665_v31  ;;  %4664 = vmatmul.mubr.msk.f32.vlgmr.msra.gmra.mrb[10].mxu0 %vm337_vm0, %v5842_v41 }
  0xdc   : > { %v5871_v52 = vmul.f32 %v5581_v10, %v664_v38  ;;  %v620_v37 = vpop.permute.xlu1 %619  ;;  %4864 = vmatpush3.bf16.msra.mxu0 %v5772_v32 }
  0xdd   : > { %v616_v48 = vpop.permute.xlu0 %615  ;;  %v667_v44 = vmul.f32 %v620_v37, %v5482_v61  ;;  %4870 = vmatprep.subr.bf16.mxu0 %v5854_v24 }
  0xde   : > { %v666_v31 = vmul.f32 %v616_v48, %v5475_v56  ;;  %4670 = vmatprep.mubr.msk.f32.mxu1 %vm337_vm0, %v5871_v52  ;;  %v6444_v56 = vld [vmem:[#allocation5_spill] sm:$0xff] }
  0xdf   : > { %v5884_v10 = vmul.f32 %v5585_v25, %v667_v44  ;;  %4671 = vmatmul.mubr.msk.f32.vlgmr.msra.gmra.mrb[10].mxu1 %vm337_vm0, %v5866_v60 }
  0xe0   : > { %v5889_v38 = vmul.f32 %v5585_v25, %v666_v31  ;;  %v627_v61 = vpop.permute.xlu1 %626  ;;  %4868 = vmatpush3.bf16.msra.mxu1 %v5830_v33 }
  0xe1   : > { %v623_v37 = vpop.permute.xlu0 %622  ;;  %v669_v36 = vmul.f32 %v627_v61, %v6443_v26  ;;  %4874 = vmatprep.subr.bf16.mxu1 %v5878_v18  ;;  %v6445_v61 = vld [vmem:[#allocation8_spill] sm:$0xff] }
  0xe2   : > { %v668_v48 = vmul.f32 %v623_v37, %v6444_v56  ;;  %4677 = vmatprep.mubr.msk.f32.mxu0 %vm337_vm0, %v5889_v38 }
  0xe3   : > { %v5898_v44 = vmul.f32 %v5588_v35, %v669_v36  ;;  %4678 = vmatmul.mubr.msk.f32.vlgmr.msra.gmra.mrb[12].mxu0 %vm337_vm0, %v5884_v10 }
  0xe4   : > { %v5903_v25 = vmul.f32 %v5588_v35, %v668_v48  ;;  %v634_v31 = vpop.permute.xlu1 %633  ;;  %4872 = vmatpush3.bf16.msra.mxu0 %v5854_v24 }
  0xe5   : > { %v630_v26 = vpop.permute.xlu0 %629  ;;  %v671_v42 = vmul.f32 %v634_v31, %v6445_v61 }
  0xe6   : > { %v670_v37 = vmul.f32 %v630_v26, %v6446_v29  ;;  %4684 = vmatprep.mubr.msk.f32.mxu1 %vm337_vm0, %v5903_v25  ;;  %v2002_v29 = vmul.f32 2.0, %v5599_v57  ;;  %v6447_v26 = vld [vmem:[#allocation9_spill] sm:$0xff] }
  0xe7   : > { %v5911_v36 = vmul.f32 %v5591_v40, %v671_v42  ;;  %4685 = vmatmul.mubr.msk.f32.vlgmr.msra.gmra.mrb[12].mxu1 %vm337_vm0, %v5898_v44 }
  0xe8   : > { %v5916_v35 = vmul.f32 %v5591_v40, %v670_v37  ;;  %v641_v56 = vpop.permute.xlu1 %640  ;;  %4876 = vmatpush3.bf16.msra.mxu1 %v5878_v18 }
  0xe9   : > { %v637_v48 = vpop.permute.xlu0 %636  ;;  %v673_v31 = vmul.f32 %v641_v56, %v5533_v17  ;;  %v2004_v17 = vmul.f32 2.0, %v5642_v54  ;;  %v2003_v54 = vmul.f32 2.0, %v5613_v58 }
  0xea   : > { %v672_v61 = vmul.f32 %v637_v48, %v6447_v26  ;;  %4691 = vmatprep.mubr.msk.f32.mxu0 %vm337_vm0, %v5916_v35 }
  0xeb   : > { %v5925_v42 = vmul.f32 %v5594_v4, %v673_v31  ;;  %4692 = vmatmul.mubr.msk.f32.vlgmr.msra.gmra.mrb[14].mxu0 %vm337_vm0, %v5911_v36 }
  0xec   : > { %v5930_v40 = vmul.f32 %v5594_v4, %v672_v61  ;;  %4705 = vmatprep.mubr.msk.f32.mxu0 %vm337_vm0, %v2002_v29  ;;  %v2006_v29 = vmul.f32 2.0, %v5620_v0  ;;  %v2010_v0 = vmul.f32 2.0, %v5633_v55  ;;  %v2014_v55 = vmul.f32 2.0, %v5692_v5 }
  0xed   : > { %v2009_v5 = vmul.f32 2.0, %v5727_v20  ;;  %v2019_v20 = vmul.f32 2.0, %v5768_v50 }
  0xee   : > { %4698 = vmatprep.mubr.msk.f32.mxu1 %vm337_vm0, %v5930_v40 }
  0xef   : > { %4699 = vmatmul.mubr.msk.f32.vlgmr.msra.gmra.mrb[14].mxu1 %vm337_vm0, %v5925_v42 }
  0xf0   : > { %4712 = vmatprep.mubr.msk.f32.mxu1 %vm337_vm0, %v2004_v17 }
 0x189   : > { %v4595_v57 = vpop.f32.mrb[0].mxu0 }
 0x18a   : > { %v778_v37 = vpop.f32.mrb[1].mxu0 }
 0x18b   : > { %v5939_v56 = vpack.c.bf16 %v4595_v57, %v778_v37  ;;  %v2007_v37 = vmul.f32 2.0, %v5639_v7  ;;  %v2011_v7 = vmul.f32 2.0, %v5668_v34  ;;  %v2015_v34 = vmul.f32 2.0, %v5720_v53 }
 0x18d   : > { %v4609_v48 = vpop.f32.mrb[2].mxu0  ;;  %4878 = vmatprep.subr.bf16.mxu0 %v5939_v56 }
 0x18e   : > { %v940_v4 = vpop.f32.mrb[3].mxu0  ;;  %4880 = vmatpush3.bf16.msra.mxu0 %v5939_v56 }
 0x18f   : > { %v5944_v31 = vpack.c.bf16 %v4609_v48, %v940_v4  ;;  %v2005_v48 = vmul.f32 2.0, %v5674_v8  ;;  %v2008_v4 = vmul.f32 2.0, %v5697_v15  ;;  %v2018_v15 = vmul.f32 2.0, %v5741_v59 }
 0x191   : > { %v4602_v26 = vpop.f32.mrb[0].mxu1  ;;  %v4623_v61 = vpop.f32.mrb[4].mxu0  ;;  %4706 = vmatmul.mubr.msk.f32.vlgmr.msra.gmra.mrb[16].mxu0 %vm337_vm0, %v2003_v54  ;;  %4886 = vmatprep.subr.bf16.mxu0 %v5944_v31 }
 0x192   : > { %v859_v17 = vpop.f32.mrb[1].mxu1  ;;  %v1102_v57 = vpop.f32.mrb[5].mxu0  ;;  %4888 = vmatpush3.bf16.msra.mxu0 %v5944_v31  ;;  %4719 = vmatprep.mubr.msk.f32.mxu0 %vm337_vm0, %v2006_v29 }
 0x193   : > { %v5952_v22 = vpack.c.bf16 %v4602_v26, %v859_v17  ;;  %v5954_v58 = vpack.c.bf16 %v4623_v61, %v1102_v57  ;;  %v2012_v57 = vmul.f32 2.0, %v5746_v27  ;;  %v2013_v27 = vmul.f32 2.0, %v5775_v6 }
 0x194   : > { %v2017_v6 = vmul.f32 2.0, %v5795_v16 }
 0x195   : > { %4882 = vmatprep.subr.bf16.mxu1 %v5952_v22  ;;  %4720 = vmatmul.mubr.msk.f32.vlgmr.msra.gmra.mrb[18].mxu0 %vm337_vm0, %v2007_v37 }
 0x196   : > { %4894 = vmatprep.subr.bf16.mxu0 %v5954_v58  ;;  %4884 = vmatpush3.bf16.msra.mxu1 %v5952_v22 }
 0x197   : > { %4896 = vmatpush3.bf16.msra.mxu0 %v5954_v58  ;;  %4733 = vmatprep.mubr.msk.f32.mxu0 %vm337_vm0, %v2010_v0 }
 0x198   : > { %v4637_v54 = vpop.f32.mrb[6].mxu0 }
 0x199   : > { %v4616_v29 = vpop.f32.mrb[2].mxu1  ;;  %4713 = vmatmul.mubr.msk.f32.vlgmr.msra.gmra.mrb[16].mxu1 %vm337_vm0, %v2005_v48  ;;  %v1264_v26 = vpop.f32.mrb[7].mxu0 }
 0x19a   : > { %4734 = vmatmul.mubr.msk.f32.vlgmr.msra.gmra.mrb[20].mxu0 %vm337_vm0, %v2011_v7  ;;  %v1021_v61 = vpop.f32.mrb[3].mxu1  ;;  %v5969_v17 = vpack.c.bf16 %v4637_v54, %v1264_v26  ;;  %4726 = vmatprep.mubr.msk.f32.mxu1 %vm337_vm0, %v2008_v4  ;;  %v2022_v54 = vmul.f32 2.0, %v5847_v47 }
 0x19b   : > { %v5972_v8 = vpack.c.bf16 %v4616_v29, %v1021_v61  ;;  %4747 = vmatprep.mubr.msk.f32.mxu0 %vm337_vm0, %v2014_v55  ;;  %v2016_v29 = vmul.f32 2.0, %v5800_v28  ;;  %v2020_v28 = vmul.f32 2.0, %v5823_v39 }
 0x19c   : > { %4902 = vmatprep.subr.bf16.mxu0 %v5969_v17 }
 0x19d   : > { %4890 = vmatprep.subr.bf16.mxu1 %v5972_v8  ;;  %4904 = vmatpush3.bf16.msra.mxu0 %v5969_v17 }
 0x19e   : > { %4892 = vmatpush3.bf16.msra.mxu1 %v5972_v8 }
 0x1a0   : > { %v4651_v37 = vpop.f32.mrb[8].mxu0  ;;  %4748 = vmatmul.mubr.msk.f32.vlgmr.msra.gmra.mrb[22].mxu0 %vm337_vm0, %v2015_v34 }
 0x1a1   : > { %v4630_v0 = vpop.f32.mrb[4].mxu1  ;;  %4727 = vmatmul.mubr.msk.f32.vlgmr.msra.gmra.mrb[18].mxu1 %vm337_vm0, %v2009_v5  ;;  %v1426_v48 = vpop.f32.mrb[9].mxu0  ;;  %4761 = vmatprep.mubr.msk.f32.mxu0 %vm337_vm0, %v2018_v15  ;;  %v2021_v15 = vmul.f32 2.0, %v5818_v63 }
 0x1a2   : > { %v1183_v7 = vpop.f32.mrb[5].mxu1  ;;  %v5986_v4 = vpack.c.bf16 %v4651_v37, %v1426_v48  ;;  %4740 = vmatprep.mubr.msk.f32.mxu1 %vm337_vm0, %v2012_v57  ;;  %v2024_v37 = vmul.f32 2.0, %v5871_v52  ;;  %v2025_v52 = vmul.f32 2.0, %v5866_v60 }
 0x1a3   : > { %v5989_v53 = vpack.c.bf16 %v4630_v0, %v1183_v7  ;;  %v2023_v0 = vmul.f32 2.0, %v5842_v41  ;;  %v2026_v7 = vmul.f32 2.0, %v5889_v38  ;;  %v2027_v38 = vmul.f32 2.0, %v5884_v10 }
 0x1a4   : > { %4910 = vmatprep.subr.bf16.mxu0 %v5986_v4 }
 0x1a5   : > { %4898 = vmatprep.subr.bf16.mxu1 %v5989_v53  ;;  %4912 = vmatpush3.bf16.msra.mxu0 %v5986_v4 }
 0x1a6   : > { %v4644_v59 = vpop.f32.mrb[6].mxu1  ;;  %4900 = vmatpush3.bf16.msra.mxu1 %v5989_v53 }
 0x1a7   : > { %v1345_v55 = vpop.f32.mrb[7].mxu1 }
 0x1a8   : > { %v5999_v26 = vpack.c.bf16 %v4644_v59, %v1345_v55  ;;  %4762 = vmatmul.mubr.msk.f32.vlgmr.msra.gmra.mrb[24].mxu0 %vm337_vm0, %v2019_v20 }
 0x1a9   : > { %4741 = vmatmul.mubr.msk.f32.vlgmr.msra.gmra.mrb[20].mxu1 %vm337_vm0, %v2013_v27  ;;  %4775 = vmatprep.mubr.msk.f32.mxu0 %vm337_vm0, %v2022_v54  ;;  %v2028_v27 = vmul.f32 2.0, %v5903_v25  ;;  %v2029_v25 = vmul.f32 2.0, %v5898_v44  ;;  %v2031_v44 = vmul.f32 2.0, %v5911_v36 }
 0x1aa   : > { %v4658_v61 = vpop.f32.mrb[8].mxu1  ;;  %4906 = vmatprep.subr.bf16.mxu1 %v5999_v26  ;;  %4754 = vmatprep.mubr.msk.f32.mxu1 %vm337_vm0, %v2016_v29  ;;  %v2030_v29 = vmul.f32 2.0, %v5916_v35 }
 0x1ab   : > { %v1507_v50 = vpop.f32.mrb[9].mxu1  ;;  %4908 = vmatpush3.bf16.msra.mxu1 %v5999_v26 }
 0x1ac   : > { %v6008_v47 = vpack.c.bf16 %v4658_v61, %v1507_v50 }
 0x1ae   : > { %v4665_v34 = vpop.f32.mrb[10].mxu0  ;;  %4755 = vmatmul.mubr.msk.f32.vlgmr.msra.gmra.mrb[22].mxu1 %vm337_vm0, %v2017_v6  ;;  %4914 = vmatprep.subr.bf16.mxu1 %v6008_v47  ;;  %v2032_v6 = vmul.f32 2.0, %v5930_v40  ;;  %v2033_v40 = vmul.f32 2.0, %v5925_v42  ;;  %v5194_v42 = vld [vmem:[%s5521_s12 + $0x8] sm:$0xff] }
 0x1af   : > { %v1588_v5 = vpop.f32.mrb[11].mxu0  ;;  %4916 = vmatpush3.bf16.msra.mxu1 %v6008_v47  ;;  %4768 = vmatprep.mubr.msk.f32.mxu1 %vm337_vm0, %v2020_v28 }
 0x1b0   : > { %v4917_v57 = vpack.c.bf16 %v4665_v34, %v1588_v5  ;;  %v5197_v5 = vld [vmem:[%s5521_s12 + $0x20] sm:$0xff] }
 0x1b2   : > { %v4672_v16 = vpop.f32.mrb[10].mxu1  ;;  %4769 = vmatmul.mubr.msk.f32.vlgmr.msra.gmra.mrb[24].mxu1 %vm337_vm0, %v2021_v15  ;;  %4918 = vmatprep.subr.bf16.mxu0 %v4917_v57 }
 0x1b3   : > { %v1669_v39 = vpop.f32.mrb[11].mxu1  ;;  %4920 = vmatpush3.bf16.msra.mxu0 %v4917_v57  ;;  %4782 = vmatprep.mubr.msk.f32.mxu1 %vm337_vm0, %v2024_v37 }
 0x1b4   : > { %v4921_v48 = vpack.c.bf16 %v4672_v16, %v1669_v39  ;;  %v5198_v16 = vld [vmem:[%s5521_s12 + $0x18] sm:$0xff] }
 0x1b6   : > { %v4679_v20 = vpop.f32.mrb[12].mxu0  ;;  %4776 = vmatmul.mubr.msk.f32.vlgmr.msra.gmra.mrb[26].mxu0 %vm337_vm0, %v2023_v0  ;;  %4922 = vmatprep.subr.bf16.mxu1 %v4921_v48 }
 0x1b7   : > { %v1750_v63 = vpop.f32.mrb[13].mxu0  ;;  %4924 = vmatpush3.bf16.msra.mxu1 %v4921_v48  ;;  %4789 = vmatprep.mubr.msk.f32.mxu0 %vm337_vm0, %v2026_v7 }
 0x1b8   : > { %v4925_v59 = vpack.c.bf16 %v4679_v20, %v1750_v63  ;;  %v5199_v20 = vld [vmem:[%s5521_s12 + $0x10] sm:$0xff] }
 0x1ba   : > { %v4686_v54 = vpop.f32.mrb[12].mxu1  ;;  %4783 = vmatmul.mubr.msk.f32.vlgmr.msra.gmra.mrb[26].mxu1 %vm337_vm0, %v2025_v52  ;;  %4926 = vmatprep.subr.bf16.mxu0 %v4925_v59 }
 0x1bb   : > { %v1831_v41 = vpop.f32.mrb[13].mxu1  ;;  %4928 = vmatpush3.bf16.msra.mxu0 %v4925_v59  ;;  %4796 = vmatprep.mubr.msk.f32.mxu1 %vm337_vm0, %v2028_v27 }
 0x1bc   : > { %v4929_v55 = vpack.c.bf16 %v4686_v54, %v1831_v41 }
 0x1be   : > { %v4693_v61 = vpop.f32.mrb[14].mxu0  ;;  %4790 = vmatmul.mubr.msk.f32.vlgmr.msra.gmra.mrb[28].mxu0 %vm337_vm0, %v2027_v38  ;;  %4930 = vmatprep.subr.bf16.mxu1 %v4929_v55 }
 0x1bf   : > { %v1912_v60 = vpop.f32.mrb[15].mxu0  ;;  %4932 = vmatpush3.bf16.msra.mxu1 %v4929_v55  ;;  %4803 = vmatprep.mubr.msk.f32.mxu0 %vm337_vm0, %v2030_v29 }
 0x1c0   : > { %v4933_v50 = vpack.c.bf16 %v4693_v61, %v1912_v60  ;;  %v5200_v61 = vld [vmem:[%s5521_s12 + $0x38] sm:$0xff] }
 0x1c2   : > { %v4700_v28 = vpop.f32.mrb[14].mxu1  ;;  %4797 = vmatmul.mubr.msk.f32.vlgmr.msra.gmra.mrb[28].mxu1 %vm337_vm0, %v2029_v25  ;;  %4934 = vmatprep.subr.bf16.mxu0 %v4933_v50 }
 0x1c3   : > { %v1993_v10 = vpop.f32.mrb[15].mxu1  ;;  %4936 = vmatpush3.bf16.msra.mxu0 %v4933_v50  ;;  %4810 = vmatprep.mubr.msk.f32.mxu1 %vm337_vm0, %v2032_v6  ;;  %v5201_v6 = vld [vmem:[%s5521_s12 + $0x30] sm:$0xff] }
 0x1c4   : > { %v4937_v34 = vpack.c.bf16 %v4700_v28, %v1993_v10  ;;  %4991 = vmatprep.subr.msk.bf16.mxu0 %vm6037_vm2, %v5683_v43  ;;  %v6450_v43 = vld [vmem:[#allocation10_spill] sm:$0xff] }
 0x1c6   : > { %4804 = vmatmul.mubr.msk.f32.vlgmr.msra.gmra.mrb[30].mxu0 %vm337_vm0, %v2031_v44  ;;  %4938 = vmatprep.subr.bf16.mxu1 %v4937_v34 }
 0x1c7   : > { %4940 = vmatpush3.bf16.msra.mxu1 %v4937_v34 }
 0x1c8   : > { %4943 = vmatprep.subr.msk.bf16.mxu1 %vm6037_vm2, %v5986_v4 }
 0x1ca   : > { %4811 = vmatmul.mubr.msk.f32.vlgmr.msra.gmra.mrb[30].mxu1 %vm337_vm0, %v2033_v40 }
 0x1cc   : > { %4994 = vmatpush3.bf16.xpose.msk.msra.mxu0 %vm6037_vm2, %v5549_v11  ;;  %v4217_v11 = vld [vmem:[%s6392_s3 + $0x20] sm:$0xff] }
 0x1cd   : > { %4997 = vmatprep.subr.msk.bf16.mxu0 %vm6037_vm2, %v5779_v2  ;;  %4501 = vmatprep.mubr.msk.f32.mxu1 %vm3371_vm1, %v4217_v11  ;;  %v3365_v2 = vld [vmem:[%s6392_s3 + $0x18] sm:$0xff] }
 0x1d0   : > { %4946 = vmatpush3.bf16.xpose.msk.msra.mxu1 %vm6037_vm2, %v5939_v56 }
 0x1d1   : > { %4949 = vmatprep.subr.msk.bf16.mxu1 %vm6037_vm2, %v6008_v47 }
 0x1d4   : > { %5000 = vmatpush3.bf16.xpose.msk.msra.mxu0 %vm6037_vm2, %v6450_v43 }
 0x1d5   : > { %5003 = vmatprep.subr.msk.bf16.mxu0 %vm6037_vm2, %v5724_v51  ;;  %v6176_v51 = vld [vmem:[%s6392_s3 + $0x40] sm:$0xff] }
 0x1d8   : > { %4952 = vmatpush3.bf16.xpose.msk.msra.mxu1 %vm6037_vm2, %v5952_v22  ;;  %v3976_v22 = vld [vmem:[%s6393_s4] sm:$0xff] }
 0x1d9   : > { %4955 = vmatprep.subr.msk.bf16.mxu1 %vm6037_vm2, %v4917_v57 }
 0x1dc   : > { %5006 = vmatpush3.bf16.xpose.msk.msra.mxu0 %vm6037_vm2, %v5551_v3  ;;  %v3362_v3 = vld [vmem:[%s6392_s3] sm:$0xff] }
 0x1dd   : > { %5009 = vmatprep.subr.msk.bf16.mxu0 %vm6037_vm2, %v5806_v45  ;;  %4541 = vmatprep.mubr.msk.f32.mxu0 %vm3371_vm1, %v3362_v3  ;;  %v3978_v45 = vld [vmem:[%s6393_s4 + $0x10] sm:$0xff] }
 0x1e0   : > { %4958 = vmatpush3.bf16.xpose.msk.msra.mxu1 %vm6037_vm2, %v5944_v31 }
 0x1e1   : > { %4961 = vmatprep.subr.msk.bf16.mxu1 %vm6037_vm2, %v4921_v48 }
 0x1e4   : > { %5012 = vmatpush3.bf16.xpose.msk.msra.mxu0 %vm6037_vm2, %v5561_v12  ;;  %v4218_v12 = vld [vmem:[%s6392_s3 + $0x28] sm:$0xff] }
 0x1e5   : > { %5015 = vmatprep.subr.msk.bf16.mxu0 %vm6037_vm2, %v5772_v32  ;;  %v5266_v32 = vmov 0  }
 0x1e6   : > { %5161 = vset.pattern.permute.xlu1 %v5266_v32  ;;  %5160 = vset.pattern.permute.xlu0 %v5266_v32 }
 0x1e7   : > { %3982 = vperm.xlu0 %5160, %v3976_v22  }
 0x1e8   : > { %4964 = vmatpush3.bf16.xpose.msk.msra.mxu1 %vm6037_vm2, %v5972_v8 }
 0x1e9   : > { %4967 = vmatprep.subr.msk.bf16.mxu1 %vm6037_vm2, %v4925_v59 }
 0x1ec   : > { %5018 = vmatpush3.bf16.xpose.msk.msra.mxu0 %vm6037_vm2, %v5617_v46  ;;  %v3363_v46 = vld [vmem:[%s6392_s3 + $0x8] sm:$0xff] }
 0x1ed   : > { %5021 = vmatprep.subr.msk.bf16.mxu0 %vm6037_vm2, %v5830_v33  ;;  %v3977_v33 = vld [vmem:[%s6393_s4 + $0x8] sm:$0xff] }
 0x1ee   : > { %3987 = vperm.xlu1 %5161, %v3977_v33  }
 0x1f0   : > { %4970 = vmatpush3.bf16.xpose.msk.msra.mxu1 %vm6037_vm2, %v5954_v58  ;;  %v5195_v58 = vld [vmem:[%s5521_s12] sm:$0xff] }
 0x1f1   : > { %4973 = vmatprep.subr.msk.bf16.mxu1 %vm6037_vm2, %v4929_v55 }
 0x1f2   : > { %3992 = vperm.xlu1 %5161, %v3978_v45  }
 0x1f4   : > { %5024 = vmatpush3.bf16.xpose.msk.msra.mxu0 %vm6037_vm2, %v5679_v14  ;;  %v4220_v14 = vld [vmem:[%s6392_s3 + $0x38] sm:$0xff] }
 0x1f5   : > { %5027 = vmatprep.subr.msk.bf16.mxu0 %vm6037_vm2, %v5854_v24  ;;  %v6181_v24 = vld [vmem:[%s6392_s3 + $0x50] sm:$0xff] }
 0x1f8   : > { %4976 = vmatpush3.bf16.xpose.msk.msra.mxu1 %vm6037_vm2, %v5989_v53  ;;  %v5196_v53 = vld [vmem:[%s5521_s12 + $0x28] sm:$0xff]  ;;  %s5202_s12 = scalar_lea.vmem %s6339_s30, 1024 }
 0x1f9   : > { %4979 = vmatprep.subr.msk.bf16.mxu1 %vm6037_vm2, %v4933_v50  ;;  %p5203_p12 = scmp.ne.s32.totalorder %s6339_s30, %s5202_s12  ;;  %p5210_p2 = scmp.lt.s32.totalorder %s5208_s13, %s5202_s12 }
 0x1fb   : > { %p5204_p13 = pnand %p5203_p12, %p5339_p5  ;;  %p5211_p3 = por %p5210_p2, %p5209_p1 }
 0x1fc   : > { %5030 = vmatpush3.bf16.xpose.msk.msra.mxu0 %vm6037_vm2, %v5647_v13  ;;  %v4219_v13 = vld [vmem:[%s6392_s3 + $0x30] sm:$0xff] }
 0x1fd   : > { %5033 = vmatprep.subr.msk.bf16.mxu0 %vm6037_vm2, %v5878_v18  ;;  %v3979_v18 = vld [vmem:[%s6393_s4 + $0x18] sm:$0xff]  ;;  %p5205_p0 = pneg %p5204_p13 }
 0x1fe   : > { %3997 = vperm.xlu0 %5160, %v3979_v18  }
 0x1ff   : > { %p5212_p4 = pnand %p5211_p3, %p5205_p0 }
 0x200   : > { %4982 = vmatpush3.bf16.xpose.msk.msra.mxu1 %vm6037_vm2, %v5969_v17 }
 0x201   : > { %4985 = vmatprep.subr.msk.bf16.mxu1 %vm6037_vm2, %v4937_v34 }
 0x204   : > { %5036 = vmatpush3.bf16.xpose.msk.msra.mxu0 %vm6037_vm2, %v5731_v49  ;;  %v3364_v49 = vld [vmem:[%s6392_s3 + $0x10] sm:$0xff] }
 0x208   : > { %4988 = vmatpush3.bf16.xpose.msk.msra.mxu1 %vm6037_vm2, %v5999_v26 }
 0x20b   : > { %4542 = vmatmul.mubr.msk.f32.vlgmr.msra.gmra.mrb[32].mxu0 %vm3371_vm1, %v3362_v3 }
 0x20c   : > { %4543 = vmatprep.mubr.msk.f32.mxu0 %vm3371_vm1, %v3363_v46 }
 0x20f   : > { %4502 = vmatmul.mubr.msk.f32.vlgmr.msra.gmra.mrb[32].mxu1 %vm3371_vm1, %v4217_v11  ;;  %4544 = vmatmul.mubr.msk.f32.gmra.mrb[34].mxu0 %vm3371_vm1, %v3363_v46 }
 0x210   : > { %4503 = vmatprep.mubr.msk.f32.mxu1 %vm3371_vm1, %v4218_v12  ;;  %4545 = vmatprep.mubr.msk.f32.mxu0 %vm3371_vm1, %v3364_v49 }
 0x213   : > { %4504 = vmatmul.mubr.msk.f32.gmra.mrb[34].mxu1 %vm3371_vm1, %v4218_v12  ;;  %4546 = vmatmul.mubr.msk.f32.gmra.mrb[36].mxu0 %vm3371_vm1, %v3364_v49  ;;  %v6452_v12 = vld [vmem:[#allocation11_spill] sm:$0xff] }
 0x214   : > { %4505 = vmatprep.mubr.msk.f32.mxu1 %vm3371_vm1, %v4219_v13  ;;  %4547 = vmatprep.mubr.msk.f32.mxu0 %vm3371_vm1, %v3365_v2 }
 0x217   : > { %4506 = vmatmul.mubr.msk.f32.gmra.mrb[36].mxu1 %vm3371_vm1, %v4219_v13  ;;  %4548 = vmatmul.mubr.msk.f32.gmra.mrb[38].mxu0 %vm3371_vm1, %v3365_v2 }
 0x218   : > { %4507 = vmatprep.mubr.msk.f32.mxu1 %vm3371_vm1, %v4220_v14  ;;  %4581 = vmatprep.mubr.msk.f32.mxu0 %vm3371_vm1, %v6176_v51 }
 0x21b   : > { %4508 = vmatmul.mubr.msk.f32.gmra.mrb[38].mxu1 %vm3371_vm1, %v4220_v14  ;;  %v6453_v14 = vld [vmem:[#allocation16_spill] sm:$0xff] }
 0x21c   : > { %4585 = vmatprep.mubr.msk.f32.mxu1 %vm3371_vm1, %v6181_v24 }
 0x264   : > { %v4707_v36 = vpop.f32.mrb[16].mxu0 }
 0x265   : > { %v3331_v56 = vsub.f32 %v4707_v36, %v5194_v42  ;;  %v2106_v31 = vpop.f32.mrb[17].mxu0  ;;  %v6455_v36 = vld [vmem:[#allocation19_spill] sm:$0xff] }
 0x266   : > { %v3330_v17 = vsub.f32 %v2106_v31, %v5195_v58  ;;  %v6456_v58 = vld [vmem:[#allocation14_spill] sm:$0xff] }
 0x268   : > { %v5040_v8 = vpack.c.bf16 %v3331_v56, %v3330_v17  ;;  %v4721_v4 = vpop.f32.mrb[18].mxu0 }
 0x269   : > { %v3335_v26 = vsub.f32 %v4721_v4, %v5196_v53  ;;  %v2268_v47 = vpop.f32.mrb[19].mxu0  ;;  %v6457_v53 = vld [vmem:[#allocation13_spill] sm:$0xff] }
 0x26a   : > { %v3334_v15 = vsub.f32 %v2268_v47, %v5197_v5  ;;  %v6458_v47 = vld [vmem:[#allocation21_spill] sm:$0xff] }
 0x26c   : > { %v6205_v57 = vpack.c.bf16 %v3335_v26, %v3334_v15  ;;  %v4714_v37 = vpop.f32.mrb[16].mxu1 }
 0x26d   : > { %v3333_v39 = vsub.f32 %v4714_v37, %v5198_v16  ;;  %v4735_v0 = vpop.f32.mrb[20].mxu0  ;;  %v2187_v48 = vpop.f32.mrb[17].mxu1  ;;  %v6459_v37 = vld [vmem:[#allocation20_spill] sm:$0xff] }
 0x26e   : > { %v3339_v7 = vsub.f32 %v4735_v0, %v5606_v30  ;;  %v3332_v63 = vsub.f32 %v2187_v48, %v5199_v20  ;;  %v2430_v52 = vpop.f32.mrb[21].mxu0  ;;  %v6460_v48 = vld [vmem:[#allocation18_spill] sm:$0xff] }
 0x26f   : > { %v3338_v59 = vsub.f32 %v2430_v52, %v5603_v62 }
 0x270   : > { %v5046_v27 = vpack.c.bf16 %v3333_v39, %v3332_v63  ;;  %v6461_v63 = vld [vmem:[#allocation17_spill] sm:$0xff] }
 0x271   : > { %v6211_v54 = vpack.c.bf16 %v3339_v7, %v3338_v59 }
 0x273   : > { %v4749_v41 = vpop.f32.mrb[22].mxu0 }
 0x274   : > { %v4728_v38 = vpop.f32.mrb[18].mxu1  ;;  %v3343_v55 = vsub.f32 %v4749_v41, %v5627_v1  ;;  %v2592_v29 = vpop.f32.mrb[23].mxu0  ;;  %v6451_v1 = vld [vmem:[#allocation12_spill] sm:$0xff]  ;;  %v6462_v41 = vld [vmem:[#allocation23_spill] sm:$0xff] }
 0x275   : > { %v3337_v60 = vsub.f32 %v4728_v38, %v5200_v61  ;;  %v2349_v25 = vpop.f32.mrb[19].mxu1  ;;  %v3342_v50 = vsub.f32 %v2592_v29, %v5624_v23  ;;  %v6463_v29 = vld [vmem:[#allocation22_spill] sm:$0xff] }
 0x276   : > { %v3336_v30 = vsub.f32 %v2349_v25, %v5201_v6 }
 0x277   : > { %v6217_v28 = vpack.c.bf16 %v3343_v55, %v3342_v50  ;;  %v6464_v50 = vld [vmem:[#allocation25_spill] sm:$0xff] }
 0x278   : > { %v5058_v10 = vpack.c.bf16 %v3337_v60, %v3336_v30 }
 0x27b   : > { %v4763_v44 = vpop.f32.mrb[24].mxu0 }
 0x27c   : > { %v4742_v62 = vpop.f32.mrb[20].mxu1  ;;  %v3347_v34 = vsub.f32 %v4763_v44, %v5660_v19  ;;  %v2754_v40 = vpop.f32.mrb[25].mxu0  ;;  %v6465_v44 = vld [vmem:[#allocation24_spill] sm:$0xff] }
 0x27d   : > { %v3341_v43 = vsub.f32 %v4742_v62, %v5654_v9  ;;  %v2511_v11 = vpop.f32.mrb[21].mxu1  ;;  %v3346_v3 = vsub.f32 %v2754_v40, %v6451_v1  ;;  %v6454_v9 = vld [vmem:[#allocation15_spill] sm:$0xff]  ;;  %v6467_v1 = vld [vmem:[#allocation26_spill] sm:$0xff] }
 0x27e   : > { %v3340_v46 = vsub.f32 %v2511_v11, %v6452_v12  ;;  %v6466_v40 = vld [vmem:[#allocation27_spill] sm:$0xff] }
 0x27f   : > { %v5037_v13 = vpack.c.bf16 %v3347_v34, %v3346_v3 }
 0x280   : > { %v6223_v49 = vpack.c.bf16 %v3341_v43, %v3340_v46 }
 0x281   : > { %v4756_v23 = vpop.f32.mrb[22].mxu1  ;;  %5039 = vmatprep.subr.msk.bf16.mxu0 %vm6037_vm2, %v5037_v13  ;;  %5085 = vmatprep.subr.msk.bf16.mxu1 %vm6037_vm2, %v5037_v13 }
 0x282   : > { %v3345_v19 = vsub.f32 %v4756_v23, %v6453_v14  ;;  %v2673_v2 = vpop.f32.mrb[23].mxu1  ;;  %5042 = vmatpush3.bf16.xpose.msk.msra.mxu0 %vm6037_vm2, %v5040_v8  ;;  %5093 = vmatpush3.bf16.xpose.msk.msra.mxu1 %vm6037_vm2, %v5040_v8 }
 0x283   : > { %v3344_v33 = vsub.f32 %v2673_v2, %v6454_v9 }
 0x285   : > { %v6235_v22 = vpack.c.bf16 %v3345_v19, %v3344_v33  ;;  %v4770_v32 = vpop.f32.mrb[24].mxu1 }
 0x286   : > { %v3349_v45 = vsub.f32 %v4770_v32, %v5762_v21  ;;  %v2835_v18 = vpop.f32.mrb[25].mxu1 }
 0x287   : > { %v3348_v42 = vsub.f32 %v2835_v18, %v6455_v36  ;;  %v4018_v18 = vlaneseq  ;;  %v3988_v36 = vpop.permute.xlu1 %3987 }
 0x289   : > { %v5043_v56 = vpack.c.bf16 %v3349_v45, %v3348_v42  ;;  %v4777_v31 = vpop.f32.mrb[26].mxu0  ;;  %v4019_v42 = vshrl.u32 %v4018_v18, 7 }
 0x28a   : > { %v3351_v17 = vsub.f32 %v4777_v31, %v6456_v58  ;;  %v2916_v4 = vpop.f32.mrb[27].mxu0 }
 0x28b   : > { %v3350_v26 = vsub.f32 %v2916_v4, %v6457_v53  ;;  %5045 = vmatprep.subr.msk.bf16.mxu0 %vm6037_vm2, %v5043_v56  ;;  %5086 = vmatprep.subr.msk.bf16.mxu1 %vm6037_vm2, %v5043_v56  ;;  %v3983_v56 = vpop.permute.xlu0 %3982  ;;  %v4020_v31 = vsub.s32 0, %v4019_v42  ;;  %v3993_v58 = vpop.permute.xlu1 %3992  ;;  %v4016_v4 = vld [vmem:[%s270_s17] sm:$0x3] }
 0x28c   : > { %5048 = vmatpush3.bf16.xpose.msk.msra.mxu0 %vm6037_vm2, %v5046_v27  ;;  %5094 = vmatpush3.bf16.xpose.msk.msra.mxu1 %vm6037_vm2, %v5046_v27 }
 0x28d   : > { %v5049_v21 = vpack.c.bf16 %v3351_v17, %v3350_v26  ;;  %v4784_v8 = vpop.f32.mrb[26].mxu1  ;;  %v4024_v26 = vsub.s32 1, %v4019_v42 }
 0x28e   : > { %v3353_v5 = vsub.f32 %v4784_v8, %v6458_v47  ;;  %v2997_v15 = vpop.f32.mrb[27].mxu1 }
 0x28f   : > { %v3352_v16 = vsub.f32 %v2997_v15, %v6459_v37  ;;  %5051 = vmatprep.subr.msk.bf16.mxu0 %vm6037_vm2, %v5049_v21  ;;  %5087 = vmatprep.subr.msk.bf16.mxu1 %vm6037_vm2, %v5049_v21 }
 0x291   : > { %v5055_v39 = vpack.c.bf16 %v3353_v5, %v3352_v16  ;;  %v4791_v0 = vpop.f32.mrb[28].mxu0 }
 0x292   : > { %v3355_v7 = vsub.f32 %v4791_v0, %v6460_v48  ;;  %v3078_v20 = vpop.f32.mrb[29].mxu0 }
 0x293   : > { %v3354_v52 = vsub.f32 %v3078_v20, %v6461_v63 }
 0x294   : > { %5054 = vmatpush3.bf16.xpose.msk.msra.mxu0 %vm6037_vm2, %v6205_v57  ;;  %5095 = vmatpush3.bf16.xpose.msk.msra.mxu1 %vm6037_vm2, %v6205_v57 }
 0x295   : > { %v5061_v59 = vpack.c.bf16 %v3355_v7, %v3354_v52  ;;  %v4798_v27 = vpop.f32.mrb[28].mxu1  ;;  %5057 = vmatprep.subr.msk.bf16.mxu0 %vm6037_vm2, %v5055_v39  ;;  %5088 = vmatprep.subr.msk.bf16.mxu1 %vm6037_vm2, %v5055_v39  ;;  %v4021_v39 = vrot.slane %v4016_v4, %v4020_v31  ;;  %v4025_v7 = vrot.slane %v4016_v4, %v4024_v26 }
 0x296   : > { %v3357_v38 = vsub.f32 %v4798_v27, %v6462_v41  ;;  %v3159_v55 = vpop.f32.mrb[29].mxu1 }
 0x297   : > { %v3356_v61 = vsub.f32 %v3159_v55, %v6463_v29 }
 0x299   : > { %v5067_v60 = vpack.c.bf16 %v3357_v38, %v3356_v61  ;;  %v4805_v25 = vpop.f32.mrb[30].mxu0 }
 0x29a   : > { %v3359_v6 = vsub.f32 %v4805_v25, %v6464_v50  ;;  %v3240_v30 = vpop.f32.mrb[31].mxu0  ;;  %v3998_v25 = vpop.permute.xlu0 %3997 }
 0x29b   : > { %v3358_v57 = vsub.f32 %v3240_v30, %v6465_v44 }
 0x29c   : > { %5060 = vmatpush3.bf16.xpose.msk.msra.mxu0 %vm6037_vm2, %v5058_v10  ;;  %5096 = vmatpush3.bf16.xpose.msk.msra.mxu1 %vm6037_vm2, %v5058_v10 }
 0x29d   : > { %v5073_v62 = vpack.c.bf16 %v3359_v6, %v3358_v57  ;;  %v4812_v34 = vpop.f32.mrb[30].mxu1  ;;  %5063 = vmatprep.subr.msk.bf16.mxu0 %vm6037_vm2, %v5061_v59  ;;  %5089 = vmatprep.subr.msk.bf16.mxu1 %vm6037_vm2, %v5061_v59 }
 0x29e   : > { %v3361_v43 = vsub.f32 %v4812_v34, %v6466_v40  ;;  %v3321_v11 = vpop.f32.mrb[31].mxu1 }
 0x29f   : > { %v3360_v3 = vsub.f32 %v3321_v11, %v6467_v1 }
 0x2a1   : > { %v5079_v12 = vpack.c.bf16 %v3361_v43, %v3360_v3 }
 0x2a4   : > { %5066 = vmatpush3.bf16.xpose.msk.msra.mxu0 %vm6037_vm2, %v6211_v54  ;;  %5097 = vmatpush3.bf16.xpose.msk.msra.mxu1 %vm6037_vm2, %v6211_v54  ;;  %v4294_v54 = vld [vmem:[%s6392_s3 + $0x48] sm:$0xff] }
 0x2a5   : > { %5069 = vmatprep.subr.msk.bf16.mxu0 %vm6037_vm2, %v5067_v60  ;;  %5090 = vmatprep.subr.msk.bf16.mxu1 %vm6037_vm2, %v5067_v60 }
 0x2ac   : > { %5072 = vmatpush3.bf16.xpose.msk.msra.mxu0 %vm6037_vm2, %v6223_v49  ;;  %5098 = vmatpush3.bf16.xpose.msk.msra.mxu1 %vm6037_vm2, %v6223_v49 }
 0x2ad   : > { %5075 = vmatprep.subr.msk.bf16.mxu0 %vm6037_vm2, %v5073_v62  ;;  %5091 = vmatprep.subr.msk.bf16.mxu1 %vm6037_vm2, %v5073_v62 }
 0x2b4   : > { %5078 = vmatpush3.bf16.xpose.msk.msra.mxu0 %vm6037_vm2, %v6217_v28  ;;  %5099 = vmatpush3.bf16.xpose.msk.msra.mxu1 %vm6037_vm2, %v6217_v28  ;;  %v4296_v28 = vld [vmem:[%s6392_s3 + $0x58] sm:$0xff] }
 0x2b5   : > { %5081 = vmatprep.subr.msk.bf16.mxu0 %vm6037_vm2, %v5079_v12  ;;  %5092 = vmatprep.subr.msk.bf16.mxu1 %vm6037_vm2, %v5079_v12 }
 0x2bc   : > { %5084 = vmatpush3.bf16.xpose.msk.msra.mxu0 %vm6037_vm2, %v6235_v22  ;;  %5100 = vmatpush3.bf16.xpose.msk.msra.mxu1 %vm6037_vm2, %v6235_v22 }
 0x2c3   : > { %4582 = vmatmul.mubr.msk.f32.vlgmr.msra.gmra.mrb[32].mxu0 %vm3371_vm1, %v6176_v51  ;;  %4586 = vmatmul.mubr.msk.f32.vlgmr.msra.gmra.mrb[40].mxu1 %vm3371_vm1, %v6181_v24 }
 0x2c4   : > { %4583 = vmatprep.mubr.msk.f32.mxu0 %vm3371_vm1, %v4294_v54  ;;  %4587 = vmatprep.mubr.msk.f32.mxu1 %vm3371_vm1, %v4296_v28 }
 0x2c7   : > { %4584 = vmatmul.mubr.msk.f32.gmra.mrb[34].mxu0 %vm3371_vm1, %v4294_v54  ;;  %4588 = vmatmul.mubr.msk.f32.gmra.mrb[42].mxu1 %vm3371_vm1, %v4296_v28 }
 0x2e2   : > { %v3546_v35 = vpop.f32.mrb[32].mxu1 }
 0x2e3   : > { %v3548_v10 = vpop.f32.mrb[33].mxu1 }
 0x2e6   : > { %v3552_v46 = vpop.f32.mrb[34].mxu1  ;;  %v3755_v23 = vpop.f32.mrb[36].mxu0 }
 0x2e7   : > { %v3554_v13 = vpop.f32.mrb[35].mxu1  ;;  %v3757_v19 = vpop.f32.mrb[37].mxu0 }
 0x2ea   : > { %v3558_v49 = vpop.f32.mrb[36].mxu1  ;;  %v3761_v9 = vpop.f32.mrb[38].mxu0 }
 0x2eb   : > { %v3756_v14 = vadd.f32 %v3755_v23, %v3558_v49  ;;  %v3560_v51 = vpop.f32.mrb[37].mxu1  ;;  %v3763_v32 = vpop.f32.mrb[39].mxu0 }
 0x2ec   : > { %v3758_v2 = vadd.f32 %v3757_v19, %v3560_v51 }
 0x2ee   : > { %v3564_v24 = vpop.f32.mrb[38].mxu1 }
 0x2ef   : > { %v3762_v33 = vadd.f32 %v3761_v9, %v3564_v24  ;;  %v3566_v22 = vpop.f32.mrb[39].mxu1 }
 0x2f0   : > { %v3764_v45 = vadd.f32 %v3763_v32, %v3566_v22 }
 0x396   : > { %v3945_v17 = vpop.f32.mrb[32].mxu0  ;;  %v3957_v53 = vpop.f32.mrb[40].mxu1 }
 0x397   : > { %v5101_v21 = vadd.f32 %v3945_v17, %v3546_v35  ;;  %v3972_v8 = vadd.f32 %v3957_v53, %v3756_v14  ;;  %v3947_v47 = vpop.f32.mrb[33].mxu0  ;;  %v3959_v5 = vpop.f32.mrb[41].mxu1 }
 0x398   : > { %v5102_v15 = vadd.f32 %v3947_v47, %v3548_v10  ;;  %v3973_v37 = vadd.f32 %v3959_v5, %v3758_v2 }
 0x399   : > { %v4000_v16 = vadd.f32 %v5101_v21, %v3983_v56  ;;  %v4004_v0 = vadd.f32 %v3993_v58, %v3972_v8 }
 0x39a   : > { %v4001_v48 = vadd.f32 %v5102_v15, %v3983_v56  ;;  %v4005_v20 = vadd.f32 %v3993_v58, %v3973_v37  ;;  %v3951_v63 = vpop.f32.mrb[34].mxu0  ;;  %v3963_v52 = vpop.f32.mrb[42].mxu1 }
 0x39b   : > { %v4008_v59 = vmax.f32 %v4000_v16, 0.0  ;;  %v4012_v27 = vmax.f32 %v4004_v0, 0.0  ;;  %v5103_v41 = vadd.f32 %v3951_v63, %v3552_v46  ;;  %v3974_v38 = vadd.f32 %v3963_v52, %v3762_v33  ;;  %v3953_v55 = vpop.f32.mrb[35].mxu0  ;;  %v3965_v29 = vpop.f32.mrb[43].mxu1 }
 0x39c   : > { %v4009_v61 = vmax.f32 %v4001_v48, 0.0  ;;  %v4013_v60 = vmax.f32 %v4005_v20, 0.0  ;;  %v5104_v50 = vadd.f32 %v3953_v55, %v3554_v13  ;;  %v3975_v6 = vadd.f32 %v3965_v29, %v3764_v45 }
 0x39d   : > { %v4028_v30 = vmul.f32 %v4021_v39, %v4008_v59  ;;  %v4032_v44 = vmul.f32 %v4021_v39, %v4012_v27  ;;  %v4002_v57 = vadd.f32 %v5103_v41, %v3988_v36  ;;  %v4006_v62 = vadd.f32 %v3998_v25, %v3974_v38 }
 0x39e   : > { %v4029_v34 = vmul.f32 %v4025_v7, %v4009_v61  ;;  %v4033_v40 = vmul.f32 %v4025_v7, %v4013_v60  ;;  %v4003_v43 = vadd.f32 %v5104_v50, %v3988_v36  ;;  %v4007_v11 = vadd.f32 %v3998_v25, %v3975_v6 }
 0x39f   : > { %4036 = vst [vmem:[%s252_s26] sm:$0xff] %v4028_v30  ;;  %4040 = vst [vmem:[%s252_s26 + $0x20] sm:$0xff] %v4032_v44  ;;  %v4010_v1 = vmax.f32 %v4002_v57, 0.0  ;;  %v4014_v3 = vmax.f32 %v4006_v62, 0.0 }
 0x3a0   : > { %4037 = vst [vmem:[%s252_s26 + $0x8] sm:$0xff] %v4029_v34  ;;  %4041 = vst [vmem:[%s252_s26 + $0x28] sm:$0xff] %v4033_v40  ;;  %v4011_v12 = vmax.f32 %v4003_v43, 0.0  ;;  %v4015_v54 = vmax.f32 %v4007_v11, 0.0 }
 0x3a1   : > { %v4030_v28 = vmul.f32 %v4021_v39, %v4010_v1  ;;  %v4034_v35 = vmul.f32 %v4021_v39, %v4014_v3 }
 0x3a2   : > { %v4031_v10 = vmul.f32 %v4025_v7, %v4011_v12  ;;  %v4035_v46 = vmul.f32 %v4025_v7, %v4015_v54 }
 0x3a3   : > { %4038 = vst [vmem:[%s252_s26 + $0x10] sm:$0xff] %v4030_v28  ;;  %4042 = vst [vmem:[%s252_s26 + $0x30] sm:$0xff] %v4034_v35 }
 0x3a4   : > { %4039 = vst [vmem:[%s252_s26 + $0x18] sm:$0xff] %v4031_v10  ;;  %4043 = vst [vmem:[%s252_s26 + $0x38] sm:$0xff] %v4035_v46 }
 0x3a5   : > { %5215 = shalt.err (!%p5212_p4)
}
 0x3a6   : > { %s5216_s14 = scalar_lea.hbm %s6344_s22, 1024  ;;  %s5220_s17 = scalar_lea.hbm %s6394_s5, 2048 }
 0x3a7   : > { %p5217_p7 = scmp.ne.s32.totalorder %s6344_s22, %s5216_s14  ;;  %p5221_p10 = scmp.lt.u32.totalorder %s6344_s22, %s6394_s5 }
 0x3a8   : > { %p5222_p11 = scmp.lt.u32.totalorder %s5220_s17, %s5216_s14  ;;  %p5224_p13 = scmp.lt.u32.totalorder %s5216_s14, %s6344_s22 }
 0x3a9   : > { %p5218_p8 = pnand %p5217_p7, %p5339_p5 }
 0x3aa   : > { %p5223_p12 = por %p5222_p11, %p5221_p10 }
 0x3ab   : > { %p5219_p9 = pneg %p5218_p8 }
 0x3ac   : > { %p5225_p0 = por %p5224_p13, %p5223_p12 }
 0x3ae   : > { %p5226_p1 = pnand %p5225_p0, %p5219_p9 }
 0x3b0   : > { %5229 = shalt.err (!%p5226_p1)
}
 0x3b1   : > { %s5268_s26 = smov 256   ;;  %s5269_s6 = smov 512  }
 0x3b2   : > { %s5270_s7 = smov 16  }
 0x3b3   : > { %5117 = dma.vmem_to_hbm [thread:$0]  (%p5339_p5), %s6339_s30, 1024, %s6344_s22, %s6348_s9, %s5268_s26, %s5269_s6, %s5270_s7  }
 0x3b4 PF: > { %p5123_p2 = scmp.ge.s32.totalorder %s5264_s21, 2  ;;  %s4073_s8 = sand.u32 1, %s5252_s18  }
 0x3b5   : > { %s4074_s12 = scalar_lea.sflag [#allocation3], %s4073_s8 }
 0x3b6   : > { %p5120_p3 = pnand %p5123_p2, %p5343_p6 }
 0x3b8   : > { %5247 = dma.done.wait (!%p5120_p3), %s4074_s12, 1024  }
 0x3b9   : > { %5249 = vsyncadd (!%p5120_p3), %s4074_s12, 4294966272  ;;  %p15_p4 = scmp.ge.s32.totalorder %s5326_s24, 4   ;;  %s6468_s18 = smov %s5256_s19 }
 0x3ba   : > { %s6469_s19 = smov %s5260_s20  ;;  %s6470_s20 = smov %s5337_s27 }
 0x3bb   : > { %s6471_s21 = smov %s5326_s24  ;;  %17 = sbr.rel (!%p15_p4) target bundleno = 3 (0x3), region = 83 }
 0x3c2   :  { %4079 = vsyncpa [#allocation3], 1 }
 0x3c3   :  { %4081 = vsyncpa [#allocation3 + $0x1], 1 }

</bundles_post_ra>
